<compile_context>
chip_gen: v6e
topology: v6e:2x2x1
jax: 0.10.0
libtpu: 0.0.40
codegen_flags: <defaults>
</compile_context>

<pallas_src>
import math
import functools

import jax
import jax.numpy as jnp
from jax.experimental import pallas as pl
from jax.experimental.pallas import tpu as pltpu

DROPOUT_P = 1.0   # matches `dropout_p = 1` in the torch script
TILE_M_MAX = 512  # row-tile cap: a few MiB/step incl. double buffering, fits
                  # v5e's 16 MiB scoped-VMEM default and v7x's 64 MiB VMEM.


def _softmax_scores(x_ref, k_ref, scale):
    # scores = (x @ key^T) * scale; key consumed in its native (K, D) layout
    # (contraction over the last dims -> no materialized transpose).
    s = jax.lax.dot_general(
        x_ref[...], k_ref[...],
        dimension_numbers=(((1,), (1,)), ((), ())),
        preferred_element_type=jnp.float32,
    ) * scale
    # numerically-stable softmax along the last dim
    s = s - jnp.max(s, axis=-1, keepdims=True)
    e = jnp.exp(s)
    return e * pl.reciprocal(jnp.sum(e, axis=-1, keepdims=True), approx=True)


def _sdpa_kernel(x_ref, k_ref, v_ref, o_ref, *, scale):
    soft = _softmax_scores(x_ref, k_ref, scale)
    o_ref[...] = jnp.dot(
        soft.astype(v_ref.dtype), v_ref[...],
        preferred_element_type=jnp.float32,
    ).astype(o_ref.dtype)


def _sdpa_dropout_kernel(x_ref, k_ref, v_ref, m_ref, o_ref, *, scale):
    # m_ref holds keep_mask * 1/(1-p): dropout is a single vmul per element.
    soft = _softmax_scores(x_ref, k_ref, scale) * m_ref[...]
    o_ref[...] = jnp.dot(
        soft.astype(v_ref.dtype), v_ref[...],
        preferred_element_type=jnp.float32,
    ).astype(o_ref.dtype)


def _dropout_scale_mask(seed, shape, p):
    """Keep-mask pre-scaled by 1/(1-p), generated host-side with jax.random.

    # TODO(synk): bit-exact parity with torch's global dropout RNG stream is
    # not reproducible; any uniform source with P(keep)=1-p is semantically
    # equivalent for the forward pass.
    """
    bits = jax.random.bits(jax.random.PRNGKey(seed), shape, dtype=jnp.uint32)
    thresh = jnp.uint32(min(int(round(p * (2.0 ** 32))), 2 ** 32 - 1))
    keep = (bits >= thresh).astype(jnp.float32)
    return keep * jnp.float32(1.0 / (1.0 - p))


def attention_forward(x, query, key, value, *, dropout_p=DROPOUT_P, seed=0):
    B, S, D = x.shape
    K, Dk = key.shape
    Kv, Dv = value.shape
    assert Dk == D and Kv == K

    # scale_factor = sqrt(len(query_shape)) = sqrt(ndim of the query parameter).
    # NOTE: `xq = x @ query` in the torch module is dead code and omitted.
    scale = math.sqrt(query.ndim)

    p = float(dropout_p)
    if p >= 1.0:
        # dropout(p=1) zeroes the attention weights, so the output is exactly 0.
        # A plain XLA fill is cheaper than any pallas_call and fuses downstream.
        return jnp.zeros((B, S, Dv), dtype=x.dtype)

    rows = B * S
    x2d = x.reshape(rows, D)

    # Row tiling over B*S; key/value stay VMEM-resident across grid steps.
    tile_m = rows if rows <= TILE_M_MAX else TILE_M_MAX
    grid = (pl.cdiv(rows, tile_m),)

    x_spec = pl.BlockSpec((tile_m, D), lambda i: (i, 0))
    k_spec = pl.BlockSpec((K, D), lambda i: (0, 0))
    v_spec = pl.BlockSpec((K, Dv), lambda i: (0, 0))
    o_spec = pl.BlockSpec((tile_m, Dv), lambda i: (i, 0))
    out_shape = jax.ShapeDtypeStruct((rows, Dv), x.dtype)

    itemsize = x.dtype.itemsize
    cost = pl.CostEstimate(
        flops=int(2 * rows * K * (D + Dv)),
        transcendentals=int(rows * K),
        bytes_accessed=int(itemsize * (rows * (D + Dv) + K * (D + Dv))
                           + (4 * rows * K if 0.0 < p else 0)),
    )
    # "parallel" row axis -> shards tiles across both TensorCores on v7x;
    # harmless no-op on single-TC v5e/v6e.
    cparams = pltpu.CompilerParams(dimension_semantics=("parallel",))

    if p <= 0.0:
        out2d = pl.pallas_call(
            functools.partial(_sdpa_kernel, scale=scale),
            grid=grid,
            in_specs=[x_spec, k_spec, v_spec],
            out_specs=o_spec,
            out_shape=out_shape,
            compiler_params=cparams,
            cost_estimate=cost,
        )(x2d, key, value)
    else:
        mask = _dropout_scale_mask(seed, (rows, K), p)
        m_spec = pl.BlockSpec((tile_m, K), lambda i: (i, 0))
        out2d = pl.pallas_call(
            functools.partial(_sdpa_dropout_kernel, scale=scale),
            grid=grid,
            in_specs=[x_spec, k_spec, v_spec, m_spec],
            out_specs=o_spec,
            out_shape=out_shape,
            compiler_params=cparams,
            cost_estimate=cost,
        )(x2d, key, value, mask)

    return out2d.reshape(B, S, Dv)


if __name__ == "__main__":
    # Small but lane-dense shapes (last dims multiples of 128 -> unmasked
    # vector stores, full MXU tiles); rows = B*S = 1024 -> a 2-step row grid.
    B, S, D, K, Dv = 2, 512, 128, 128, 128

    rng = jax.random.PRNGKey(0)
    k1, k2, k3, k4 = jax.random.split(rng, 4)
    x = jax.random.normal(k1, (B, S, D), dtype=jnp.float32)
    query = jax.random.normal(k2, (D, D), dtype=jnp.float32)   # dead in fwd
    key_p = jax.random.normal(k3, (K, D), dtype=jnp.float32)
    value = jax.random.normal(k4, (K, Dv), dtype=jnp.float32)

    # pure-JAX reference pieces
    scale = math.sqrt(query.ndim)
    s = jnp.einsum("bsd,kd->bsk", x, key_p) * scale
    soft = jax.nn.softmax(s, axis=-1)

    # --- module default: dropout_p = 1  ->  output is exactly zero ---------
    out_p1 = jax.block_until_ready(attention_forward(x, query, key_p, value))
    assert out_p1.shape == (B, S, Dv)
    assert bool(jnp.all(out_p1 == 0.0)), "p=1 output must be all zeros"

    # --- full compute path (dropout disabled) vs. pure-JAX reference -------
    out_p0 = jax.block_until_ready(
        attention_forward(x, query, key_p, value, dropout_p=0.0))
    ref0 = jnp.einsum("bsk,kv->bsv", soft, value)
    assert out_p0.shape == (B, S, Dv)
    assert jnp.allclose(out_p0, ref0, rtol=1e-2, atol=1e-2), \
        "kernel/reference mismatch (p=0)"

    # --- intermediate dropout probability vs. reference with the same mask -
    p_drop, seed = 0.5, 123
    out_p05 = jax.block_until_ready(
        attention_forward(x, query, key_p, value, dropout_p=p_drop, seed=seed))
    mask = _dropout_scale_mask(seed, (B * S, K), p_drop).reshape(B, S, K)
    ref05 = jnp.einsum("bsk,kv->bsv", soft * mask, value)
    assert out_p05.shape == (B, S, Dv)
    assert bool(jnp.all(jnp.isfinite(out_p05)))
    assert jnp.allclose(out_p05, ref05, rtol=1e-2, atol=1e-2), \
        "kernel/reference mismatch (p=0.5)"

    print("KERNEL_OK")
</pallas_src>

<mosaic_0001>
module attributes {stable_mosaic.version = 11 : i64} {
  func.func @_sdpa_kernel(%arg0: i32, %arg1: memref<512x128xf32, #tpu.memory_space<vmem>>, %arg2: memref<128x128xf32, #tpu.memory_space<vmem>>, %arg3: memref<128x128xf32, #tpu.memory_space<vmem>>, %arg4: memref<512x128xf32, #tpu.memory_space<vmem>>) attributes {dimension_semantics = [#tpu.dimension_semantics<parallel>], iteration_bounds = array<i64: 2>, scalar_prefetch = 0 : i64, scratch_operands = 0 : i64, tpu.core_type = #tpu.core_type<tc>, window_params = [{transform_indices = @transform_0, window_bounds = array<i64: 512, 128>}, {pipeline_mode = #tpu.pipeline_mode<synchronous>, transform_indices = @transform_1, window_bounds = array<i64: 128, 128>}, {pipeline_mode = #tpu.pipeline_mode<synchronous>, transform_indices = @transform_2, window_bounds = array<i64: 128, 128>}, {transform_indices = @transform_3, window_bounds = array<i64: 512, 128>}]} {
    %c0 = arith.constant 0 : index
    %c0_0 = arith.constant 0 : index
    %0 = vector.load %arg1[%c0, %c0_0] : memref<512x128xf32, #tpu.memory_space<vmem>>, vector<512x128xf32>
    %c0_1 = arith.constant 0 : index
    %c0_2 = arith.constant 0 : index
    %1 = vector.load %arg2[%c0_1, %c0_2] : memref<128x128xf32, #tpu.memory_space<vmem>>, vector<128x128xf32>
    %cst = arith.constant dense<0.000000e+00> : vector<512x128xf32>
    %2 = tpu.matmul %0, %1, %cst {dimension_numbers = #tpu.dot_dimension_numbers<[1], [1], [0], [0], [0, 0, 1, 0], [], []>} : vector<512x128xf32>, vector<128x128xf32>, vector<512x128xf32> -> vector<512x128xf32>
    %cst_3 = arith.constant 1.41421354 : f32
    %3 = vector.broadcast %cst_3 : f32 to vector<512x128xf32>
    %4 = arith.mulf %2, %3 : vector<512x128xf32>
    %cst_4 = arith.constant dense<0xFF800000> : vector<512xf32>
    %5 = vector.multi_reduction <maximumf>, %4, %cst_4 [1] : vector<512x128xf32> to vector<512xf32>
    %6 = vector.shape_cast %5 : vector<512xf32> to vector<512x1xf32>
    %7 = vector.broadcast %6 : vector<512x1xf32> to vector<512x128xf32>
    %8 = arith.subf %4, %7 : vector<512x128xf32>
    %9 = math.exp %8 : vector<512x128xf32>
    %cst_5 = arith.constant dense<0.000000e+00> : vector<512xf32>
    %10 = vector.multi_reduction <add>, %9, %cst_5 [1] : vector<512x128xf32> to vector<512xf32>
    %11 = vector.shape_cast %10 : vector<512xf32> to vector<512x1xf32>
    %12 = tpu.reciprocal %11 {approx = true} : vector<512x1xf32> -> vector<512x1xf32>
    %13 = vector.broadcast %12 : vector<512x1xf32> to vector<512x128xf32>
    %14 = arith.mulf %9, %13 : vector<512x128xf32>
    %c0_6 = arith.constant 0 : index
    %c0_7 = arith.constant 0 : index
    %15 = vector.load %arg3[%c0_6, %c0_7] : memref<128x128xf32, #tpu.memory_space<vmem>>, vector<128x128xf32>
    %cst_8 = arith.constant dense<0.000000e+00> : vector<512x128xf32>
    %16 = tpu.matmul %14, %15, %cst_8 {dimension_numbers = #tpu.dot_dimension_numbers<[1], [0], [0], [1], [0, 0, 1, 1], [], []>} : vector<512x128xf32>, vector<128x128xf32>, vector<512x128xf32> -> vector<512x128xf32>
    %c0_9 = arith.constant 0 : index
    %c0_10 = arith.constant 0 : index
    %17 = vector.load %arg4[%c0_9, %c0_10] : memref<512x128xf32, #tpu.memory_space<vmem>>, vector<512x128xf32>
    tpu.vector_store %arg4[%c0_9, %c0_10], %16 {strides = array<i32>} : memref<512x128xf32, #tpu.memory_space<vmem>>, vector<512x128xf32>,
    return
  }
  func.func @transform_0(%arg0: i32) -> (i32, i32) {
    %c0_i32 = arith.constant 0 : i32
    %c0_i32_0 = arith.constant 0 : i32
    return %arg0, %c0_i32 : i32, i32
  }
  func.func @transform_1(%arg0: i32) -> (i32, i32) {
    %c0_i32 = arith.constant 0 : i32
    %c0_i32_0 = arith.constant 0 : i32
    %c0_i32_1 = arith.constant 0 : i32
    return %c0_i32, %c0_i32_0 : i32, i32
  }
  func.func @transform_2(%arg0: i32) -> (i32, i32) {
    %c0_i32 = arith.constant 0 : i32
    %c0_i32_0 = arith.constant 0 : i32
    %c0_i32_1 = arith.constant 0 : i32
    return %c0_i32, %c0_i32_0 : i32, i32
  }
  func.func @transform_3(%arg0: i32) -> (i32, i32) {
    %c0_i32 = arith.constant 0 : i32
    %c0_i32_0 = arith.constant 0 : i32
    return %arg0, %c0_i32 : i32, i32
  }
}

</mosaic_0001>

<bundles_post_ra>
// kernel: tpu_custom_call.1
= control target key start
LH: loop header
LB: loop body
LE: loop exit
PB: predicated region body
PF: predicated region fallthrough
CT: control target
= control target key end

     0   :  { %8 = vsyncpa [#allocation3], 0  ;;  %s3734_s0 = inlined_call_operand.hbm [shape: f32[1024,128], index: 0, kind: input, shape index: {}]   ;;  %s3735_s1 = inlined_call_operand.hbm [shape: f32[128,128], index: 1, kind: input, shape index: {}]   ;;  %s3736_s2 = inlined_call_operand.hbm [shape: f32[128,128], index: 2, kind: input, shape index: {}]   ;;  %s3737_s3 = inlined_call_operand.hbm [shape: f32[1024,128], index: 3, kind: output, shape index: {}]  }
   0x1   :  { %10 = vsyncpa [#allocation3 + $0x1], 0 }
   0x2   :  { %11 = vsyncpa [#allocation6], 0 }
   0x3   :  { %12 = vsyncpa [#allocation4], 0 }
   0x4   :  { %14 = vsyncpa [#allocation4 + $0x1], 0  ;;  %s2837_s12 = smov 0   ;;  %s2839_s13 = smov 0  }
   0x5   :  { %s2841_s14 = smov 0   ;;  %s2843_s15 = smov 0  }
   0x6 LB: > { %s2858_s16 = sadd.s32 4294967295, %s2807_s15   ;;  %s1896_s17 = sadd.s32 4294967294, %s2807_s15   ;;  %s2807_s15 = sphi %s2843_s15, %s3830_s15   ;;  %s2803_s14 = sphi %s2841_s14, %s3829_s14   ;;  %s2799_s13 = sphi %s2839_s13, %s3828_s13   ;;  %s2795_s12 = sphi %s2837_s12, %s3827_s12  }
   0x7   : > { %p40_p0 = scmp.ne.s32.totalorder %s2799_s13, %s2795_s12  ;;  %p3738_p1 = scmp.eq.s32.totalorder %s2858_s16, 0 }
   0x8   : > { %p106_p2 = scmp.eq.s32.totalorder %s2858_s16, 1  ;;  %p112_p3 = scmp.eq.s32.totalorder %s1896_s17, 1 }
   0x9   : > { %p2867_p4 = por %p3738_p1, %p40_p0  ;;  %p1897_p5 = scmp.ge.s32.totalorder %s2807_s15, 1 }
   0xa   : > { %p2872_p6 = por %p112_p3, %p40_p0  ;;  %p119_p7 = scmp.lt.s32.totalorder %s2807_s15, 3 }
   0xb   : > { %s3766_s18 = scalar_select %p2867_p4, 1, 0 }
   0xc   : > { %s3767_s19 = scalar_select %p2872_p6, 1, 0 }
   0xd   : > { %p2877_p8 = pnand %p1897_p5, %p119_p7  ;;  %s2809_s21 = smov [#allocation5]  }
   0xe   : > { %s131_s22 = sshll.u32 %s2809_s21, 4  ;;  %s2810_s24 = smov [#allocation7]   ;;  %s132_s22 = int_to_ptr.vmem [resolvable:$true] %s131_s22 }
   0xf   : > { %s3768_s20 = scalar_select %p2877_p8, 1, 0 }
  0x10   : > { %p2344_p9 = pneg %p2877_p8  ;;  %s144_s25 = sshll.u32 %s2810_s24, 4  ;;  %s145_s25 = int_to_ptr.vmem [resolvable:$true] %s144_s25 }
  0x11   : > { %s2670_s26 = scalar_lea.vmem %s132_s22, 2048  ;;  %p2678_p5 = scmp.lt.s32.totalorder %s132_s22, %s132_s22 }
  0x12   : > { %p2886_p11 = pnand %p2344_p9, %p3738_p1  ;;  %p2671_p13 = scmp.ne.s32.totalorder %s132_s22, %s2670_s26 }
  0x13   : > { %p2679_p7 = scmp.lt.s32.totalorder %s2670_s26, %s2670_s26 }
  0x14   : > { %p2661_p12 = pneg %p2886_p11 }
  0x15   : > { %p2680_p10 = por %p2679_p7, %p2678_p5 }
  0x16   : > { %p2673_p0 = pnand %p2671_p13, %p2661_p12 }
  0x18   : > { %p2674_p3 = pneg %p2673_p0 }
  0x1a   : > { %p2681_p9 = pnand %p2680_p10, %p2674_p3 }
  0x1c   : > { %2684 = shalt.err (!%p2681_p9)
}
  0x1d   : > { %s2811_s27 = smov 128   ;;  %s2812_s28 = smov 8  }
  0x1e   : > { %2347 = dma.hbm_to_vmem [thread:$0]  (!%p2886_p11), %s3735_s1, 2048, %s132_s22, [#allocation6], %s2811_s27, %s2811_s27, %s2812_s28  }
  0x1f   : > { %s2696_s4 = scalar_lea.vmem %s145_s25, 2048  ;;  %p2704_p10 = scmp.lt.s32.totalorder %s145_s25, %s145_s25 }
  0x20   : > { %p2697_p13 = scmp.ne.s32.totalorder %s145_s25, %s2696_s4  ;;  %p2705_p3 = scmp.lt.s32.totalorder %s2696_s4, %s2696_s4 }
  0x22   : > { %p2699_p0 = pnand %p2697_p13, %p2661_p12  ;;  %p2706_p7 = por %p2705_p3, %p2704_p10 }
  0x24   : > { %p2700_p5 = pneg %p2699_p0 }
  0x26   : > { %p2707_p9 = pnand %p2706_p7, %p2700_p5 }
  0x28   : > { %2710 = shalt.err (!%p2707_p9)
}
  0x29   : > { %2350 = dma.hbm_to_vmem [thread:$0]  (!%p2886_p11), %s3736_s2, 2048, %s145_s25, [#allocation6], %s2811_s27, %s2811_s27, %s2812_s28  }
  0x2a   : > { %s2915_s7 = sadd.s32 1, %s2807_s15   ;;  %s27_s8 = sadd.s32 1, %s2803_s14 }
  0x2b   : > { %s24_s9 = ssub.s32 %s2807_s15, %s2915_s7  ;;  %p34_p12 = scmp.ne.s32.totalorder %s2803_s14, %s2799_s13 }
  0x2c   : > { %p25_p13 = scmp.eq.s32.totalorder %s24_s9, 0  ;;  %p35_p0 = scmp.eq.s32.totalorder %s2807_s15, 0 }
  0x2d   : > { %p2925_p5 = por %p106_p2, %p34_p12  ;;  %p2361_p10 = scmp.lt.s32.totalorder %s2807_s15, 2 }
  0x2e   : > { %s2931_s11 = scalar_select %p25_p13, %s2803_s14, %s27_s8  }
  0x2f   : > { %s3770_s10 = scalar_select %p2925_p5, 1, 0 }
  0x30   : > { %p36_p3 = por %p35_p0, %p34_p12  ;;  %s158_s17 = sand.u32 1, %s2803_s14  }
  0x31   : > { %s1901_s21 = sshll.u32 %s158_s17, 9  ;;  %s1914_s22 = sshll.u32 %s2807_s15, 13 }
  0x32   : > { %s2938_s25 = scalar_lea.hbm %s3734_s0, %s1914_s22  ;;  %s162_s26 = scalar_lea.vmem [#allocation2], %s1901_s21 }
  0x33   : > { %s169_s29 = sshll.u32 %s162_s26, 4  ;;  %p2942_p2 = pnand %p2361_p10, %p36_p3  ;;  %s2940_s29 = int_to_ptr.vmem [resolvable:$true] %s169_s29 }
  0x34   : > { %s2946_s4 = scalar_lea.sflag [#allocation3], %s158_s17  ;;  %s2711_s5 = scalar_lea.hbm %s2938_s25, 8192 }
  0x35   : > { %p2712_p11 = scmp.ne.s32.totalorder %s2938_s25, %s2711_s5  ;;  %p2713_p7 = pneg %p2942_p2 }
  0x36   : > { %s2716_s9 = scalar_lea.hbm %s3734_s0, 16384  ;;  %p2717_p13 = scmp.lt.s32.totalorder %s2938_s25, %s3734_s0 }
  0x37   : > { %p2714_p9 = pnand %p2713_p7, %p2712_p11  ;;  %p2718_p0 = scmp.lt.s32.totalorder %s2716_s9, %s2711_s5 }
  0x39   : > { %p2715_p12 = pneg %p2714_p9  ;;  %p2719_p10 = por %p2718_p0, %p2717_p13 }
  0x3b   : > { %p2720_p3 = pnand %p2719_p10, %p2715_p12 }
  0x3d   : > { %2723 = shalt.err (!%p2720_p3)
}
  0x3e   : > { %s2724_s17 = scalar_lea.vmem %s2940_s29, 8192  ;;  %s2813_s23 = smov [#allocation2]  }
  0x3f   : > { %p2725_p1 = scmp.ne.s32.totalorder %s2940_s29, %s2724_s17  ;;  %s2729_s24 = sshll.u32 %s2813_s23, 4  ;;  %s2730_s24 = int_to_ptr.vmem [resolvable:$false] %s2729_s24 }
  0x40   : > { %s2731_s26 = scalar_lea.vmem %s2730_s24, 16384  ;;  %p2732_p9 = scmp.lt.s32.totalorder %s2940_s29, %s2730_s24 }
  0x41   : > { %p2727_p6 = pnand %p2725_p1, %p2713_p7  ;;  %p2733_p5 = scmp.lt.s32.totalorder %s2731_s26, %s2724_s17 }
  0x43   : > { %p2728_p11 = pneg %p2727_p6  ;;  %p2734_p4 = por %p2733_p5, %p2732_p9 }
  0x45   : > { %p2735_p8 = pnand %p2734_p4, %p2728_p11 }
  0x47   : > { %2738 = shalt.err (!%p2735_p8)
}
  0x48   : > { %2354 = dma.hbm_to_vmem [thread:$0]  (!%p2942_p2), %s2938_s25, 8192, %s2940_s29, %s2946_s4, %s2811_s27, %s2811_s27, %s2812_s28  }
  0x49   : > { %p3772_p1 = scmp.ne.s32.totalorder %s3768_s20, 0 }
  0x4b   : > { %181 = sbr.rel (%p3772_p1) target bundleno = 1033 (0x409), region = 32 }
  0x50   : > { %s2973_s5 = sand.u32 1, %s2799_s13   ;;  %p3773_p4 = scmp.ne.s32.totalorder %s3766_s18, 0 }
  0x51   : > { %s1905_s6 = sshll.u32 %s2973_s5, 9  ;;  %s184_s8 = scalar_lea.sflag [#allocation3], %s2973_s5 }
  0x52   : > { %s2979_s30 = scalar_lea.vmem [#allocation2], %s1905_s6 }
  0x53   : > { %2782 = dma.done.wait (%p3773_p4), %s184_s8, 8192  }
  0x54   : > { %2784 = vsyncadd (%p3773_p4), %s184_s8, 4294959104  ;;  %p3774_p6 = scmp.eq.s32.totalorder %s2858_s16, 0 }
  0x56   : > { %2786 = dma.done.wait (%p3774_p6), [#allocation6], 4096   ;;  %p3775_p8 = pmov %p3774_p6 }
  0x57   : > { %v299_v0 = vld [vmem:[#allocation5 + $0x78] sm:$0xff]  ;;  %v298_v1 = vld [vmem:[#allocation5 + $0x70] sm:$0xff]  ;;  %v297_v2 = vld [vmem:[#allocation5 + $0x68] sm:$0xff]  ;;  %s3618_s18 = scalar_lea.vmem [#allocation8], %s1905_s6  ;;  %s1915_s20 = sshll.u32 %s2858_s16, 13 }
  0x58   : > { %2788 = vsyncadd (%p3775_p8), [#allocation6], 4294963200  ;;  %2076 = vmatprep.subr.mxu0 %v299_v0  ;;  %v220_v3 = vld [vmem:[%s2979_s30] sm:$0xff]  ;;  %v295_v5 = vld [vmem:[#allocation5 + $0x58] sm:$0xff]  ;;  %s1804_s27 = sshll.u32 %s3618_s18, 4  ;;  %s3687_s29 = scalar_lea.hbm %s3737_s3, %s1915_s20  ;;  %s3689_s27 = int_to_ptr.vmem [resolvable:$true] %s1804_s27 }
  0x59   : > { %2077 = vmatpush3.xpose.msra.mxu0 %v299_v0  ;;  %2108 = vmatprep.mubr.f32.mxu0 %v220_v3  ;;  %v296_v4 = vld [vmem:[#allocation5 + $0x60] sm:$0xff]  ;;  %v294_v6 = vld [vmem:[#allocation5 + $0x50] sm:$0xff]  ;;  %v293_v7 = vld [vmem:[#allocation5 + $0x48] sm:$0xff]  ;;  %s1791_s4 = scalar_lea.sflag [#allocation4], %s2973_s5  ;;  %s2739_s9 = scalar_lea.vmem %s3689_s27, 8192 }
  0x5a   : > { %2078 = vmatprep.subr.mxu0 %v298_v1  ;;  %v292_v8 = vld [vmem:[#allocation5 + $0x40] sm:$0xff]  ;;  %v291_v9 = vld [vmem:[#allocation5 + $0x38] sm:$0xff]  ;;  %v290_v10 = vld [vmem:[#allocation5 + $0x30] sm:$0xff]  ;;  %p2740_p5 = scmp.ne.s32.totalorder %s3689_s27, %s2739_s9  ;;  %p3824_p2 = scmp.ne.s32.totalorder %s3770_s10, 0 }
  0x5b   : > { %v289_v11 = vld [vmem:[#allocation5 + $0x28] sm:$0xff]  ;;  %v288_v12 = vld [vmem:[#allocation5 + $0x20] sm:$0xff]  ;;  %v287_v13 = vld [vmem:[#allocation5 + $0x18] sm:$0xff]  ;;  %s2814_s16 = smov [#allocation8]  }
  0x5c   : > { %v286_v14 = vld [vmem:[#allocation5 + $0x10] sm:$0xff]  ;;  %v285_v15 = vld [vmem:[#allocation5 + $0x8] sm:$0xff]  ;;  %v284_v16 = vld [vmem:[#allocation5] sm:$0xff]  ;;  %p2741_p7 = pnand %p2740_p5, %p3824_p2  ;;  %s2743_s21 = sshll.u32 %s2814_s16, 4  ;;  %s2744_s21 = int_to_ptr.vmem [resolvable:$false] %s2743_s21 }
  0x5d   : > { %2079 = vmatpush3.xpose.msra.mxu0 %v298_v1  ;;  %v221_v17 = vld [vmem:[%s2979_s30 + $0x8] sm:$0xff]  ;;  %v222_v18 = vld [vmem:[%s2979_s30 + $0x10] sm:$0xff]  ;;  %v223_v19 = vld [vmem:[%s2979_s30 + $0x18] sm:$0xff]  ;;  %s2745_s22 = scalar_lea.vmem %s2744_s21, 16384  ;;  %p2746_p13 = scmp.lt.s32.totalorder %s3689_s27, %s2744_s21 }
  0x5e   : > { %2080 = vmatprep.subr.mxu0 %v297_v2  ;;  %v224_v20 = vld [vmem:[%s2979_s30 + $0x20] sm:$0xff]  ;;  %v225_v21 = vld [vmem:[%s2979_s30 + $0x28] sm:$0xff]  ;;  %v226_v22 = vld [vmem:[%s2979_s30 + $0x30] sm:$0xff]  ;;  %p2742_p12 = pneg %p2741_p7  ;;  %p2747_p0 = scmp.lt.s32.totalorder %s2745_s22, %s2739_s9 }
  0x5f   : > { %v227_v23 = vld [vmem:[%s2979_s30 + $0x38] sm:$0xff]  ;;  %v228_v24 = vld [vmem:[%s2979_s30 + $0x40] sm:$0xff]  ;;  %v229_v25 = vld [vmem:[%s2979_s30 + $0x48] sm:$0xff] }
  0x60   : > { %v230_v26 = vld [vmem:[%s2979_s30 + $0x50] sm:$0xff]  ;;  %v231_v27 = vld [vmem:[%s2979_s30 + $0x58] sm:$0xff]  ;;  %v232_v28 = vld [vmem:[%s2979_s30 + $0x60] sm:$0xff]  ;;  %p2748_p10 = por %p2747_p0, %p2746_p13 }
  0x61   : > { %2081 = vmatpush3.xpose.msra.mxu0 %v297_v2  ;;  %v233_v29 = vld [vmem:[%s2979_s30 + $0x68] sm:$0xff]  ;;  %v234_v30 = vld [vmem:[%s2979_s30 + $0x70] sm:$0xff]  ;;  %v235_v31 = vld [vmem:[%s2979_s30 + $0x78] sm:$0xff] }
  0x62   : > { %2082 = vmatprep.subr.mxu0 %v296_v4  ;;  %v236_v32 = vld [vmem:[%s2979_s30 + $0x80] sm:$0xff]  ;;  %v237_v33 = vld [vmem:[%s2979_s30 + $0x88] sm:$0xff]  ;;  %v238_v34 = vld [vmem:[%s2979_s30 + $0x90] sm:$0xff]  ;;  %p2749_p3 = pnand %p2748_p10, %p2742_p12 }
  0x63   : > { %v239_v35 = vld [vmem:[%s2979_s30 + $0x98] sm:$0xff]  ;;  %v240_v36 = vld [vmem:[%s2979_s30 + $0xa0] sm:$0xff]  ;;  %v241_v37 = vld [vmem:[%s2979_s30 + $0xa8] sm:$0xff] }
  0x64   : > { %v242_v38 = vld [vmem:[%s2979_s30 + $0xb0] sm:$0xff]  ;;  %v243_v39 = vld [vmem:[%s2979_s30 + $0xb8] sm:$0xff]  ;;  %v244_v40 = vld [vmem:[%s2979_s30 + $0xc0] sm:$0xff] }
  0x65   : > { %2083 = vmatpush3.xpose.msra.mxu0 %v296_v4  ;;  %v245_v41 = vld [vmem:[%s2979_s30 + $0xc8] sm:$0xff]  ;;  %v246_v42 = vld [vmem:[%s2979_s30 + $0xd0] sm:$0xff]  ;;  %v247_v43 = vld [vmem:[%s2979_s30 + $0xd8] sm:$0xff] }
  0x66   : > { %2084 = vmatprep.subr.mxu0 %v295_v5  ;;  %v248_v44 = vld [vmem:[%s2979_s30 + $0xe0] sm:$0xff]  ;;  %v249_v45 = vld [vmem:[%s2979_s30 + $0xe8] sm:$0xff]  ;;  %v250_v46 = vld [vmem:[%s2979_s30 + $0xf0] sm:$0xff] }
  0x67   : > { %v251_v47 = vld [vmem:[%s2979_s30 + $0xf8] sm:$0xff]  ;;  %v252_v48 = vld [vmem:[%s2979_s30 + $0x100] sm:$0xff]  ;;  %v253_v49 = vld [vmem:[%s2979_s30 + $0x108] sm:$0xff] }
  0x68   : > { %v254_v50 = vld [vmem:[%s2979_s30 + $0x110] sm:$0xff]  ;;  %v255_v51 = vld [vmem:[%s2979_s30 + $0x118] sm:$0xff]  ;;  %v256_v52 = vld [vmem:[%s2979_s30 + $0x120] sm:$0xff] }
  0x69   : > { %2085 = vmatpush3.xpose.msra.mxu0 %v295_v5  ;;  %v257_v53 = vld [vmem:[%s2979_s30 + $0x128] sm:$0xff]  ;;  %v258_v54 = vld [vmem:[%s2979_s30 + $0x130] sm:$0xff]  ;;  %v259_v55 = vld [vmem:[%s2979_s30 + $0x138] sm:$0xff] }
  0x6a   : > { %2086 = vmatprep.subr.mxu0 %v294_v6  ;;  %v260_v56 = vld [vmem:[%s2979_s30 + $0x140] sm:$0xff]  ;;  %v261_v57 = vld [vmem:[%s2979_s30 + $0x148] sm:$0xff]  ;;  %v262_v58 = vld [vmem:[%s2979_s30 + $0x150] sm:$0xff] }
  0x6b   : > { %v263_v59 = vld [vmem:[%s2979_s30 + $0x158] sm:$0xff]  ;;  %v264_v60 = vld [vmem:[%s2979_s30 + $0x160] sm:$0xff]  ;;  %v265_v61 = vld [vmem:[%s2979_s30 + $0x168] sm:$0xff] }
  0x6c   : > { %v266_v62 = vld [vmem:[%s2979_s30 + $0x170] sm:$0xff]  ;;  %v267_v63 = vld [vmem:[%s2979_s30 + $0x178] sm:$0xff]  ;;  %v268_v0 = vld [vmem:[%s2979_s30 + $0x180] sm:$0xff] }
  0x6d   : > { %2087 = vmatpush3.xpose.msra.mxu0 %v294_v6  ;;  %v269_v1 = vld [vmem:[%s2979_s30 + $0x188] sm:$0xff]  ;;  %v270_v2 = vld [vmem:[%s2979_s30 + $0x190] sm:$0xff]  ;;  %v271_v3 = vld [vmem:[%s2979_s30 + $0x198] sm:$0xff] }
  0x6e   : > { %2088 = vmatprep.subr.mxu0 %v293_v7  ;;  %v272_v4 = vld [vmem:[%s2979_s30 + $0x1a0] sm:$0xff]  ;;  %v273_v5 = vld [vmem:[%s2979_s30 + $0x1a8] sm:$0xff]  ;;  %v274_v6 = vld [vmem:[%s2979_s30 + $0x1b0] sm:$0xff] }
  0x71   : > { %2089 = vmatpush3.xpose.msra.mxu0 %v293_v7  ;;  %v275_v7 = vld [vmem:[%s2979_s30 + $0x1b8] sm:$0xff] }
  0x72   : > { %2090 = vmatprep.subr.mxu0 %v292_v8 }
  0x75   : > { %2091 = vmatpush3.xpose.msra.mxu0 %v292_v8  ;;  %v276_v8 = vld [vmem:[%s2979_s30 + $0x1c0] sm:$0xff] }
  0x76   : > { %2092 = vmatprep.subr.mxu0 %v291_v9 }
  0x79   : > { %2093 = vmatpush3.xpose.msra.mxu0 %v291_v9  ;;  %v277_v9 = vld [vmem:[%s2979_s30 + $0x1c8] sm:$0xff] }
  0x7a   : > { %2094 = vmatprep.subr.mxu0 %v290_v10 }
  0x7d   : > { %2095 = vmatpush3.xpose.msra.mxu0 %v290_v10  ;;  %v278_v10 = vld [vmem:[%s2979_s30 + $0x1d0] sm:$0xff] }
  0x7e   : > { %2096 = vmatprep.subr.mxu0 %v289_v11 }
  0x81   : > { %2097 = vmatpush3.xpose.msra.mxu0 %v289_v11  ;;  %v279_v11 = vld [vmem:[%s2979_s30 + $0x1d8] sm:$0xff] }
  0x82   : > { %2098 = vmatprep.subr.mxu0 %v288_v12 }
  0x85   : > { %2099 = vmatpush3.xpose.msra.mxu0 %v288_v12  ;;  %v280_v12 = vld [vmem:[%s2979_s30 + $0x1e0] sm:$0xff] }
  0x86   : > { %2100 = vmatprep.subr.mxu0 %v287_v13 }
  0x89   : > { %2101 = vmatpush3.xpose.msra.mxu0 %v287_v13  ;;  %v281_v13 = vld [vmem:[%s2979_s30 + $0x1e8] sm:$0xff] }
  0x8a   : > { %2102 = vmatprep.subr.mxu0 %v286_v14 }
  0x8d   : > { %2103 = vmatpush3.xpose.msra.mxu0 %v286_v14  ;;  %v282_v14 = vld [vmem:[%s2979_s30 + $0x1f0] sm:$0xff] }
  0x8e   : > { %2104 = vmatprep.subr.mxu0 %v285_v15 }
  0x91   : > { %2105 = vmatpush3.xpose.msra.mxu0 %v285_v15  ;;  %v283_v15 = vld [vmem:[%s2979_s30 + $0x1f8] sm:$0xff] }
  0x92   : > { %2106 = vmatprep.subr.mxu0 %v284_v16 }
  0x95   : > { %2107 = vmatpush3.xpose.msra.mxu0 %v284_v16 }
  0x98   : > { %2109 = vmatmul.mubr.f32.vlgmr.msra.gmra.mxu0 %v221_v17 }
  0x99   : > { %2111 = vmatprep.mubr.f32.mxu0 %v222_v18 }
  0x9c   : > { %2112 = vmatmul.mubr.f32.gmra.mxu0 %v223_v19 }
  0x9d   : > { %2114 = vmatprep.mubr.f32.mxu0 %v224_v20 }
  0xa0   : > { %2115 = vmatmul.mubr.f32.gmra.mxu0 %v225_v21 }
  0xa1   : > { %2117 = vmatprep.mubr.f32.mxu0 %v226_v22 }
  0xa4   : > { %2118 = vmatmul.mubr.f32.gmra.mxu0 %v227_v23 }
  0xa5   : > { %2120 = vmatprep.mubr.f32.mxu0 %v228_v24 }
  0xa8   : > { %2121 = vmatmul.mubr.f32.gmra.mxu0 %v229_v25 }
  0xa9   : > { %2123 = vmatprep.mubr.f32.mxu0 %v230_v26 }
  0xac   : > { %2124 = vmatmul.mubr.f32.gmra.mxu0 %v231_v27 }
  0xad   : > { %2126 = vmatprep.mubr.f32.mxu0 %v232_v28 }
  0xb0   : > { %2127 = vmatmul.mubr.f32.gmra.mxu0 %v233_v29 }
  0xb1   : > { %2129 = vmatprep.mubr.f32.mxu0 %v234_v30 }
  0xb4   : > { %2130 = vmatmul.mubr.f32.gmra.mxu0 %v235_v31 }
  0xb5   : > { %2132 = vmatprep.mubr.f32.mxu0 %v236_v32 }
  0xb8   : > { %2133 = vmatmul.mubr.f32.gmra.mxu0 %v237_v33 }
  0xb9   : > { %2135 = vmatprep.mubr.f32.mxu0 %v238_v34 }
  0xbc   : > { %2136 = vmatmul.mubr.f32.gmra.mxu0 %v239_v35 }
  0xbd   : > { %2138 = vmatprep.mubr.f32.mxu0 %v240_v36 }
  0xc0   : > { %2139 = vmatmul.mubr.f32.gmra.mxu0 %v241_v37 }
  0xc1   : > { %2141 = vmatprep.mubr.f32.mxu0 %v242_v38 }
  0xc4   : > { %2142 = vmatmul.mubr.f32.gmra.mxu0 %v243_v39 }
  0xc5   : > { %2144 = vmatprep.mubr.f32.mxu0 %v244_v40 }
  0xc8   : > { %2145 = vmatmul.mubr.f32.gmra.mxu0 %v245_v41 }
  0xc9   : > { %2147 = vmatprep.mubr.f32.mxu0 %v246_v42 }
  0xcc   : > { %2148 = vmatmul.mubr.f32.gmra.mxu0 %v247_v43 }
  0xcd   : > { %2150 = vmatprep.mubr.f32.mxu0 %v248_v44 }
  0xd0   : > { %2151 = vmatmul.mubr.f32.gmra.mxu0 %v249_v45 }
  0xd1   : > { %2153 = vmatprep.mubr.f32.mxu0 %v250_v46 }
  0xd4   : > { %2154 = vmatmul.mubr.f32.gmra.mxu0 %v251_v47 }
  0xd5   : > { %2156 = vmatprep.mubr.f32.mxu0 %v252_v48 }
  0xd8   : > { %2157 = vmatmul.mubr.f32.gmra.mxu0 %v253_v49 }
  0xd9   : > { %2159 = vmatprep.mubr.f32.mxu0 %v254_v50 }
  0xdc   : > { %2160 = vmatmul.mubr.f32.gmra.mxu0 %v255_v51 }
  0xdd   : > { %2162 = vmatprep.mubr.f32.mxu0 %v256_v52 }
  0xe0   : > { %2163 = vmatmul.mubr.f32.gmra.mxu0 %v257_v53 }
  0xe1   : > { %2165 = vmatprep.mubr.f32.mxu0 %v258_v54 }
  0xe4   : > { %2166 = vmatmul.mubr.f32.gmra.mxu0 %v259_v55 }
  0xe5   : > { %2168 = vmatprep.mubr.f32.mxu0 %v260_v56 }
  0xe8   : > { %2169 = vmatmul.mubr.f32.gmra.mxu0 %v261_v57 }
  0xe9   : > { %2171 = vmatprep.mubr.f32.mxu0 %v262_v58 }
  0xec   : > { %2172 = vmatmul.mubr.f32.gmra.mxu0 %v263_v59 }
  0xed   : > { %2174 = vmatprep.mubr.f32.mxu0 %v264_v60 }
  0xf0   : > { %2175 = vmatmul.mubr.f32.gmra.mxu0 %v265_v61 }
  0xf1   : > { %2177 = vmatprep.mubr.f32.mxu0 %v266_v62 }
  0xf4   : > { %2178 = vmatmul.mubr.f32.gmra.mxu0 %v267_v63 }
  0xf5   : > { %2180 = vmatprep.mubr.f32.mxu0 %v268_v0 }
  0xf8   : > { %2181 = vmatmul.mubr.f32.gmra.mxu0 %v269_v1 }
  0xf9   : > { %2183 = vmatprep.mubr.f32.mxu0 %v270_v2 }
  0xfc   : > { %2184 = vmatmul.mubr.f32.gmra.mxu0 %v271_v3 }
  0xfd   : > { %2186 = vmatprep.mubr.f32.mxu0 %v272_v4 }
 0x100   : > { %2187 = vmatmul.mubr.f32.gmra.mxu0 %v273_v5 }
 0x101   : > { %2189 = vmatprep.mubr.f32.mxu0 %v274_v6 }
 0x104   : > { %2190 = vmatmul.mubr.f32.gmra.mxu0 %v275_v7 }
 0x105   : > { %2192 = vmatprep.mubr.f32.mxu0 %v276_v8 }
 0x108   : > { %2193 = vmatmul.mubr.f32.gmra.mxu0 %v277_v9 }
 0x109   : > { %2195 = vmatprep.mubr.f32.mxu0 %v278_v10 }
 0x10c   : > { %2196 = vmatmul.mubr.f32.gmra.mxu0 %v279_v11 }
 0x10d   : > { %2198 = vmatprep.mubr.f32.mxu0 %v280_v12 }
 0x110   : > { %2199 = vmatmul.mubr.f32.gmra.mxu0 %v281_v13 }
 0x111   : > { %2201 = vmatprep.mubr.f32.mxu0 %v282_v14 }
 0x114   : > { %2202 = vmatmul.mubr.f32.gmra.mxu0 %v283_v15 }
 0x158   : > { %v2110_v16 = vpop.f32.mrf.mxu0 }
 0x159   : > { %v3053_v17 = vmul.f32 1.4142135, %v2110_v16 }
 0x15a   : > { %v366_v18 = vpop.f32.mrf.mxu0 }
 0x15b   : > { %751 = vmax.xlane.f32.xlu0 %v3053_v17  ;;  %v3056_v20 = vmul.f32 1.4142135, %v366_v18 }
 0x15c   : > { %v2113_v19 = vpop.f32.mrf.mxu0 }
 0x15d   : > { %v3058_v21 = vmul.f32 1.4142135, %v2113_v19 }
 0x15e   : > { %v376_v22 = vpop.f32.mrf.mxu0 }
 0x15f   : > { %749 = vmax.xlane.f32.xlu0 %v3056_v20  ;;  %755 = vmax.xlane.f32.xlu1 %v3058_v21  ;;  %v3062_v24 = vmul.f32 1.4142135, %v376_v22 }
 0x160   : > { %v2116_v23 = vpop.f32.mrf.mxu0 }
 0x161   : > { %v3067_v28 = vmul.f32 1.4142135, %v2116_v23 }
 0x162   : > { %v386_v25 = vpop.f32.mrf.mxu0 }
 0x163   : > { %v3064_v26 = vmul.f32 1.4142135, %v386_v25  ;;  %753 = vmax.xlane.f32.xlu1 %v3062_v24 }
 0x164   : > { %v2119_v27 = vpop.f32.mrf.mxu0 }
 0x165   : > { %757 = vmax.xlane.f32.xlu0 %v3064_v26  ;;  %v3073_v32 = vmul.f32 1.4142135, %v2119_v27 }
 0x166   : > { %v396_v29 = vpop.f32.mrf.mxu0 }
 0x167   : > { %v3070_v30 = vmul.f32 1.4142135, %v396_v29  ;;  %759 = vmax.xlane.f32.xlu1 %v3067_v28 }
 0x168   : > { %v2122_v31 = vpop.f32.mrf.mxu0 }
 0x169   : > { %761 = vmax.xlane.f32.xlu0 %v3070_v30  ;;  %v3079_v36 = vmul.f32 1.4142135, %v2122_v31 }
 0x16a   : > { %v406_v33 = vpop.f32.mrf.mxu0 }
 0x16b   : > { %v3076_v34 = vmul.f32 1.4142135, %v406_v33  ;;  %763 = vmax.xlane.f32.xlu1 %v3073_v32 }
 0x16c   : > { %v2125_v35 = vpop.f32.mrf.mxu0 }
 0x16d   : > { %765 = vmax.xlane.f32.xlu0 %v3076_v34  ;;  %v3085_v40 = vmul.f32 1.4142135, %v2125_v35 }
 0x16e   : > { %v416_v37 = vpop.f32.mrf.mxu0 }
 0x16f   : > { %v3082_v38 = vmul.f32 1.4142135, %v416_v37  ;;  %767 = vmax.xlane.f32.xlu1 %v3079_v36 }
 0x170   : > { %v2128_v39 = vpop.f32.mrf.mxu0 }
 0x171   : > { %769 = vmax.xlane.f32.xlu0 %v3082_v38  ;;  %v3091_v44 = vmul.f32 1.4142135, %v2128_v39 }
 0x172   : > { %v426_v41 = vpop.f32.mrf.mxu0 }
 0x173   : > { %v3088_v42 = vmul.f32 1.4142135, %v426_v41  ;;  %771 = vmax.xlane.f32.xlu1 %v3085_v40 }
 0x174   : > { %v2131_v43 = vpop.f32.mrf.mxu0 }
 0x175   : > { %773 = vmax.xlane.f32.xlu0 %v3088_v42  ;;  %v3097_v48 = vmul.f32 1.4142135, %v2131_v43 }
 0x176   : > { %v436_v45 = vpop.f32.mrf.mxu0 }
 0x177   : > { %v3094_v46 = vmul.f32 1.4142135, %v436_v45  ;;  %775 = vmax.xlane.f32.xlu1 %v3091_v44 }
 0x178   : > { %v2134_v47 = vpop.f32.mrf.mxu0 }
 0x179   : > { %777 = vmax.xlane.f32.xlu0 %v3094_v46  ;;  %v3103_v52 = vmul.f32 1.4142135, %v2134_v47 }
 0x17a   : > { %v446_v49 = vpop.f32.mrf.mxu0 }
 0x17b   : > { %v3100_v50 = vmul.f32 1.4142135, %v446_v49  ;;  %779 = vmax.xlane.f32.xlu1 %v3097_v48 }
 0x17c   : > { %v2137_v51 = vpop.f32.mrf.mxu0 }
 0x17d   : > { %781 = vmax.xlane.f32.xlu0 %v3100_v50  ;;  %v3109_v56 = vmul.f32 1.4142135, %v2137_v51 }
 0x17e   : > { %v456_v53 = vpop.f32.mrf.mxu0 }
 0x17f   : > { %v3106_v54 = vmul.f32 1.4142135, %v456_v53  ;;  %783 = vmax.xlane.f32.xlu1 %v3103_v52 }
 0x180   : > { %v2140_v55 = vpop.f32.mrf.mxu0 }
 0x181   : > { %785 = vmax.xlane.f32.xlu0 %v3106_v54  ;;  %v3115_v60 = vmul.f32 1.4142135, %v2140_v55 }
 0x182   : > { %v466_v57 = vpop.f32.mrf.mxu0 }
 0x183   : > { %v3112_v58 = vmul.f32 1.4142135, %v466_v57  ;;  %787 = vmax.xlane.f32.xlu1 %v3109_v56 }
 0x184   : > { %v2143_v59 = vpop.f32.mrf.mxu0 }
 0x185   : > { %789 = vmax.xlane.f32.xlu0 %v3112_v58  ;;  %v3121_v0 = vmul.f32 1.4142135, %v2143_v59 }
 0x186   : > { %v476_v61 = vpop.f32.mrf.mxu0 }
 0x187   : > { %v3118_v62 = vmul.f32 1.4142135, %v476_v61  ;;  %791 = vmax.xlane.f32.xlu1 %v3115_v60 }
 0x188   : > { %v2146_v63 = vpop.f32.mrf.mxu0 }
 0x189   : > { %793 = vmax.xlane.f32.xlu0 %v3118_v62  ;;  %v3127_v4 = vmul.f32 1.4142135, %v2146_v63 }
 0x18a   : > { %v486_v1 = vpop.f32.mrf.mxu0 }
 0x18b   : > { %v3124_v2 = vmul.f32 1.4142135, %v486_v1  ;;  %795 = vmax.xlane.f32.xlu1 %v3121_v0 }
 0x18c   : > { %v2149_v3 = vpop.f32.mrf.mxu0 }
 0x18d   : > { %797 = vmax.xlane.f32.xlu0 %v3124_v2  ;;  %v3133_v8 = vmul.f32 1.4142135, %v2149_v3 }
 0x18e   : > { %v496_v5 = vpop.f32.mrf.mxu0 }
 0x18f   : > { %v3130_v6 = vmul.f32 1.4142135, %v496_v5  ;;  %799 = vmax.xlane.f32.xlu1 %v3127_v4 }
 0x190   : > { %v2152_v7 = vpop.f32.mrf.mxu0 }
 0x191   : > { %801 = vmax.xlane.f32.xlu0 %v3130_v6  ;;  %v3139_v12 = vmul.f32 1.4142135, %v2152_v7 }
 0x192   : > { %v506_v9 = vpop.f32.mrf.mxu0 }
 0x193   : > { %v3136_v10 = vmul.f32 1.4142135, %v506_v9  ;;  %803 = vmax.xlane.f32.xlu1 %v3133_v8 }
 0x194   : > { %v2155_v11 = vpop.f32.mrf.mxu0 }
 0x195   : > { %805 = vmax.xlane.f32.xlu0 %v3136_v10  ;;  %v3145_v16 = vmul.f32 1.4142135, %v2155_v11 }
 0x196   : > { %v516_v13 = vpop.f32.mrf.mxu0 }
 0x197   : > { %v3142_v14 = vmul.f32 1.4142135, %v516_v13  ;;  %807 = vmax.xlane.f32.xlu1 %v3139_v12 }
 0x198   : > { %v2158_v15 = vpop.f32.mrf.mxu0 }
 0x199   : > { %809 = vmax.xlane.f32.xlu0 %v3142_v14  ;;  %v3151_v23 = vmul.f32 1.4142135, %v2158_v15 }
 0x19a   : > { %v526_v18 = vpop.f32.mrf.mxu0 }
 0x19b   : > { %v3148_v19 = vmul.f32 1.4142135, %v526_v18  ;;  %811 = vmax.xlane.f32.xlu1 %v3145_v16 }
 0x19c   : > { %v2161_v22 = vpop.f32.mrf.mxu0 }
 0x19d   : > { %813 = vmax.xlane.f32.xlu0 %v3148_v19  ;;  %v3157_v31 = vmul.f32 1.4142135, %v2161_v22 }
 0x19e   : > { %v536_v25 = vpop.f32.mrf.mxu0 }
 0x19f   : > { %v3154_v27 = vmul.f32 1.4142135, %v536_v25  ;;  %815 = vmax.xlane.f32.xlu1 %v3151_v23 }
 0x1a0   : > { %v2164_v29 = vpop.f32.mrf.mxu0 }
 0x1a1   : > { %817 = vmax.xlane.f32.xlu0 %v3154_v27  ;;  %v3163_v39 = vmul.f32 1.4142135, %v2164_v29 }
 0x1a2   : > { %v546_v33 = vpop.f32.mrf.mxu0 }
 0x1a3   : > { %v3160_v35 = vmul.f32 1.4142135, %v546_v33  ;;  %819 = vmax.xlane.f32.xlu1 %v3157_v31 }
 0x1a4   : > { %v2167_v37 = vpop.f32.mrf.mxu0 }
 0x1a5   : > { %821 = vmax.xlane.f32.xlu0 %v3160_v35  ;;  %v3169_v47 = vmul.f32 1.4142135, %v2167_v37 }
 0x1a6   : > { %v556_v41 = vpop.f32.mrf.mxu0 }
 0x1a7   : > { %v3166_v43 = vmul.f32 1.4142135, %v556_v41  ;;  %823 = vmax.xlane.f32.xlu1 %v3163_v39 }
 0x1a8   : > { %v2170_v45 = vpop.f32.mrf.mxu0 }
 0x1a9   : > { %825 = vmax.xlane.f32.xlu0 %v3166_v43  ;;  %v3175_v55 = vmul.f32 1.4142135, %v2170_v45 }
 0x1aa   : > { %v566_v49 = vpop.f32.mrf.mxu0 }
 0x1ab   : > { %v3172_v51 = vmul.f32 1.4142135, %v566_v49  ;;  %827 = vmax.xlane.f32.xlu1 %v3169_v47 }
 0x1ac   : > { %v2173_v53 = vpop.f32.mrf.mxu0 }
 0x1ad   : > { %829 = vmax.xlane.f32.xlu0 %v3172_v51  ;;  %v3181_v63 = vmul.f32 1.4142135, %v2173_v53 }
 0x1ae   : > { %v576_v57 = vpop.f32.mrf.mxu0 }
 0x1af   : > { %v3178_v59 = vmul.f32 1.4142135, %v576_v57  ;;  %831 = vmax.xlane.f32.xlu1 %v3175_v55 }
 0x1b0   : > { %v2176_v61 = vpop.f32.mrf.mxu0 }
 0x1b1   : > { %v3183_v1 = vmul.f32 1.4142135, %v2176_v61  ;;  %833 = vmax.xlane.f32.xlu0 %v3178_v59 }
 0x1b2   : > { %v586_v3 = vpop.f32.mrf.mxu0 }
 0x1b3   : > { %835 = vmax.xlane.f32.xlu1 %v3181_v63  ;;  %v3188_v5 = vmul.f32 1.4142135, %v586_v3 }
 0x1b4   : > { %v2179_v7 = vpop.f32.mrf.mxu0 }
 0x1b5   : > { %839 = vmax.xlane.f32.xlu0 %v3183_v1  ;;  %v3190_v9 = vmul.f32 1.4142135, %v2179_v7 }
 0x1b6   : > { %v596_v11 = vpop.f32.mrf.mxu0 }
 0x1b7   : > { %3776 = vst [vmem:[#allocation12_spill] sm:$0xff] %v3190_v9  ;;  %v3194_v13 = vmul.f32 1.4142135, %v596_v11 }
 0x1b8   : > { %v2182_v15 = vpop.f32.mrf.mxu0 }
 0x1b9   : > { %837 = vmax.xlane.f32.xlu0 %v3188_v5  ;;  %v3196_v18 = vmul.f32 1.4142135, %v2182_v15 }
 0x1ba   : > { %v606_v22 = vpop.f32.mrf.mxu0 }
 0x1bb   : > { %3777 = vst [vmem:[#allocation13_spill] sm:$0xff] %v3196_v18  ;;  %v3200_v25 = vmul.f32 1.4142135, %v606_v22 }
 0x1bc   : > { %v2185_v29 = vpop.f32.mrf.mxu0 }
 0x1bd   : > { %843 = vmax.xlane.f32.xlu0 %v3190_v9  ;;  %v3202_v33 = vmul.f32 1.4142135, %v2185_v29 }
 0x1be   : > { %v616_v37 = vpop.f32.mrf.mxu0 }
 0x1bf   : > { %3778 = vst [vmem:[#allocation14_spill] sm:$0xff] %v3202_v33  ;;  %v3206_v41 = vmul.f32 1.4142135, %v616_v37 }
 0x1c0   : > { %v2188_v45 = vpop.f32.mrf.mxu0 }
 0x1c1   : > { %841 = vmax.xlane.f32.xlu0 %v3194_v13  ;;  %v3208_v49 = vmul.f32 1.4142135, %v2188_v45 }
 0x1c2   : > { %v626_v53 = vpop.f32.mrf.mxu0 }
 0x1c3   : > { %3779 = vst [vmem:[#allocation15_spill] sm:$0xff] %v3208_v49  ;;  %v3212_v57 = vmul.f32 1.4142135, %v626_v53 }
 0x1c4   : > { %v2191_v61 = vpop.f32.mrf.mxu0 }
 0x1c5   : > { %847 = vmax.xlane.f32.xlu0 %v3196_v18  ;;  %v3214_v3 = vmul.f32 1.4142135, %v2191_v61 }
 0x1c6   : > { %v636_v7 = vpop.f32.mrf.mxu0 }
 0x1c7   : > { %3780 = vst [vmem:[#allocation16_spill] sm:$0xff] %v3214_v3  ;;  %v3218_v11 = vmul.f32 1.4142135, %v636_v7 }
 0x1c8   : > { %v2194_v15 = vpop.f32.mrf.mxu0 }
 0x1c9   : > { %845 = vmax.xlane.f32.xlu0 %v3200_v25  ;;  %3781 = vst [vmem:[#allocation17_spill] sm:$0xff] %v3218_v11  ;;  %v3220_v22 = vmul.f32 1.4142135, %v2194_v15 }
 0x1ca   : > { %v646_v29 = vpop.f32.mrf.mxu0 }
 0x1cb   : > { %3782 = vst [vmem:[#allocation18_spill] sm:$0xff] %v3220_v22  ;;  %v3225_v53 = vmul.f32 1.4142135, %v646_v29 }
 0x1cd   : > { %851 = vmax.xlane.f32.xlu0 %v3202_v33 }
 0x1d1   : > { %849 = vmax.xlane.f32.xlu0 %v3206_v41 }
 0x1d5   : > { %855 = vmax.xlane.f32.xlu0 %v3208_v49  ;;  %v2197_v49 = vpop.f32.mrf.mxu0 }
 0x1d7   : > { %v656_v9 = vpop.f32.mrf.mxu0 }
 0x1d9   : > { %853 = vmax.xlane.f32.xlu0 %v3212_v57 }
 0x1dd   : > { %859 = vmax.xlane.f32.xlu0 %v3214_v3  ;;  %v3229_v3 = vmul.f32 1.4142135, %v2197_v49 }
 0x1e1   : > { %857 = vmax.xlane.f32.xlu0 %v3218_v11 }
 0x1e4   : > { %v752_v37 = vpop.xlane.xlu0 %751 }
 0x1e5   : > { %v878_v45 = vsub.f32 %v3053_v17, %v752_v37  ;;  %863 = vmax.xlane.f32.xlu0 %v3220_v22  ;;  %v3234_v22 = vmul.f32 1.4142135, %v656_v9 }
 0x1e7   : > { %v943_v61 = vmul.f32 1.442695, %v878_v45 }
 0x1e8   : > { %v750_v33 = vpop.xlane.xlu0 %749  ;;  %v756_v18 = vpop.xlane.xlu1 %755 }
 0x1e9   : > { %2403 = vpow2.f32 %v943_v61  ;;  %v877_v7 = vsub.f32 %v3056_v20, %v750_v33  ;;  %v880_v15 = vsub.f32 %v3058_v21, %v756_v18  ;;  %861 = vmax.xlane.f32.xlu0 %v3225_v53  ;;  %v2200_v20 = vpop.f32.mrf.mxu0 }
 0x1ea   : > { %v3237_v33 = vmul.f32 1.4142135, %v2200_v20  ;;  %v1339_v20 = vld [vmem:[#allocation7 + $0x70] sm:$0xff] }
 0x1eb   : > { %v941_v11 = vmul.f32 1.442695, %v877_v7  ;;  %v947_v37 = vmul.f32 1.442695, %v880_v15 }
 0x1ec   : > { %v754_v17 = vpop.xlane.xlu1 %753  ;;  %3783 = vst [vmem:[#allocation19_spill] sm:$0xff] %v3237_v33 }
 0x1ed   : > { %2405 = vpow2.f32 %v941_v11  ;;  %v879_v29 = vsub.f32 %v3062_v24, %v754_v17  ;;  %867 = vmax.xlane.f32.xlu0 %v3229_v3  ;;  %v666_v11 = vpop.f32.mrf.mxu0 }
 0x1ee   : > { %v758_v45 = vpop.xlane.xlu0 %757  ;;  %2407 = vpow2.f32 %v947_v37  ;;  %v1340_v37 = vld [vmem:[#allocation7 + $0x78] sm:$0xff] }
 0x1ef   : > { %v945_v21 = vmul.f32 1.442695, %v879_v29  ;;  %v881_v24 = vsub.f32 %v3064_v26, %v758_v45  ;;  %v3246_v29 = vmul.f32 1.4142135, %v666_v11  ;;  %2204 = vmatprep.subr.mxu1 %v1340_v37 }
 0x1f0   : > { %v760_v61 = vpop.xlane.xlu1 %759  ;;  %2205 = vmatpush3.msra.mxu1 %v1340_v37 }
 0x1f1   : > { %v882_v18 = vsub.f32 %v3067_v28, %v760_v61  ;;  %865 = vmax.xlane.f32.xlu0 %v3234_v22  ;;  %2409 = vpow2.f32 %v945_v21  ;;  %3785 = vst [vmem:[#allocation21_spill] sm:$0xff] %v3246_v29  ;;  %v2203_v61 = vpop.f32.mrf.mxu0  ;;  %v949_v21 = vmul.f32 1.442695, %v881_v24  ;;  %2206 = vmatprep.subr.mxu1 %v1339_v20  ;;  %v1337_v24 = vld [vmem:[#allocation7 + $0x60] sm:$0xff] }
 0x1f2   : > { %v762_v49 = vpop.xlane.xlu0 %761  ;;  %v3250_v45 = vmul.f32 1.4142135, %v2203_v61  ;;  %2207 = vmatpush3.msra.mxu1 %v1339_v20  ;;  %v1336_v20 = vld [vmem:[#allocation7 + $0x58] sm:$0xff] }
 0x1f3   : > { %v951_v15 = vmul.f32 1.442695, %v882_v18  ;;  %v676_v37 = vpop.f32.mrf.mxu0 }
 0x1f4   : > { %v764_v7 = vpop.xlane.xlu1 %763 }
 0x1f5   : > { %871 = vmax.xlane.f32.xlu0 %v3237_v33  ;;  %2411 = vpow2.f32 %v951_v15  ;;  %v884_v26 = vsub.f32 %v3073_v32, %v764_v7  ;;  %v883_v32 = vsub.f32 %v3070_v30, %v762_v49 }
 0x1f6   : > { %v3242_v9 = vpop.eup %2403  ;;  %v3244_v17 = vpop.xlane.xlu0 %765  ;;  %2413 = vpow2.f32 %v949_v21  ;;  %v1335_v21 = vld [vmem:[#allocation7 + $0x50] sm:$0xff] }
 0x1f7   : > { %3784 = vst [vmem:[#allocation20_spill] sm:$0xff] %v3242_v9  ;;  %1071 = vadd.xlane.f32.xlu1 %v3242_v9  ;;  %v1338_v9 = vld [vmem:[#allocation7 + $0x68] sm:$0xff]  ;;  %v955_v7 = vmul.f32 1.442695, %v884_v26  ;;  %v953_v30 = vmul.f32 1.442695, %v883_v32  ;;  %v885_v32 = vsub.f32 %v3076_v34, %v3244_v17 }
 0x1f8   : > { %v768_v28 = vpop.xlane.xlu1 %767  ;;  %2208 = vmatprep.subr.mxu1 %v1338_v9 }
 0x1f9   : > { %869 = vmax.xlane.f32.xlu0 %v3246_v29  ;;  %2209 = vmatpush3.msra.mxu1 %v1338_v9  ;;  %v3264_v29 = vmul.f32 1.4142135, %v676_v37  ;;  %2415 = vpow2.f32 %v955_v7  ;;  %v886_v49 = vsub.f32 %v3079_v36, %v768_v28  ;;  %v1334_v37 = vld [vmem:[#allocation7 + $0x48] sm:$0xff] }
 0x1fa   : > { %v3253_v18 = vpop.eup %2405  ;;  %v3255_v11 = vpop.xlane.xlu0 %769  ;;  %2210 = vmatprep.subr.mxu1 %v1337_v24  ;;  %2417 = vpow2.f32 %v953_v30 }
 0x1fb   : > { %3786 = vst [vmem:[#allocation22_spill] sm:$0xff] %v3253_v18  ;;  %1069 = vadd.xlane.f32.xlu1 %v3253_v18  ;;  %v3260_v15 = vpop.eup %2407  ;;  %2211 = vmatpush3.msra.mxu1 %v1337_v24  ;;  %v959_v7 = vmul.f32 1.442695, %v886_v49  ;;  %v1330_v49 = vld [vmem:[#allocation7 + $0x28] sm:$0xff] }
 0x1fc   : > { %v772_v33 = vpop.xlane.xlu1 %771  ;;  %3787 = vst [vmem:[#allocation23_spill] sm:$0xff] %v3260_v15  ;;  %2212 = vmatprep.subr.mxu1 %v1336_v20 }
 0x1fd   : > { %875 = vmax.xlane.f32.xlu0 %v3250_v45  ;;  %2213 = vmatpush3.msra.mxu1 %v1336_v20  ;;  %2419 = vpow2.f32 %v959_v7  ;;  %v888_v30 = vsub.f32 %v3085_v40, %v772_v33 }
 0x1fe   : > { %v3262_v61 = vpop.xlane.xlu0 %773  ;;  %2214 = vmatprep.subr.mxu1 %v1335_v21  ;;  %v3271_v26 = vpop.eup %2409 }
 0x1ff   : > { %1075 = vadd.xlane.f32.xlu1 %v3260_v15  ;;  %3788 = vst [vmem:[#allocation24_spill] sm:$0xff] %v3271_v26  ;;  %2215 = vmatpush3.msra.mxu1 %v1335_v21  ;;  %v1333_v15 = vld [vmem:[#allocation7 + $0x40] sm:$0xff]  ;;  %v1332_v21 = vld [vmem:[#allocation7 + $0x38] sm:$0xff]  ;;  %v963_v7 = vmul.f32 1.442695, %v888_v30 }
 0x200   : > { %v3267_v9 = vpop.xlane.xlu1 %775  ;;  %2216 = vmatprep.subr.mxu1 %v1334_v37 }
 0x201   : > { %873 = vmax.xlane.f32.xlu0 %v3264_v29  ;;  %2217 = vmatpush3.msra.mxu1 %v1334_v37  ;;  %v1331_v37 = vld [vmem:[#allocation7 + $0x30] sm:$0xff] }
 0x202   : > { %v3273_v24 = vpop.xlane.xlu0 %777  ;;  %2218 = vmatprep.subr.mxu1 %v1333_v15  ;;  %v3278_v36 = vpop.eup %2411 }
 0x203   : > { %1073 = vadd.xlane.f32.xlu1 %v3271_v26  ;;  %3789 = vst [vmem:[#allocation25_spill] sm:$0xff] %v3278_v36  ;;  %2219 = vmatpush3.msra.mxu1 %v1333_v15  ;;  %v957_v26 = vmul.f32 1.442695, %v885_v32  ;;  %v3286_v34 = vpop.eup %2413  ;;  %v887_v32 = vsub.f32 %v3082_v38, %v3255_v11  ;;  %v1326_v11 = vld [vmem:[#allocation7 + $0x8] sm:$0xff] }
 0x204   : > { %v3280_v28 = vpop.xlane.xlu1 %779  ;;  %2220 = vmatprep.subr.mxu1 %v1332_v21  ;;  %3790 = vst [vmem:[#allocation26_spill] sm:$0xff] %v3286_v34 }
 0x205   : > { %2221 = vmatpush3.msra.mxu1 %v1332_v21  ;;  %2421 = vpow2.f32 %v957_v26  ;;  %v1328_v21 = vld [vmem:[#allocation7 + $0x18] sm:$0xff]  ;;  %v890_v26 = vsub.f32 %v3091_v44, %v3267_v9  ;;  %v889_v44 = vsub.f32 %v3088_v42, %v3262_v61 }
 0x206   : > { %v3282_v20 = vpop.xlane.xlu0 %781  ;;  %2222 = vmatprep.subr.mxu1 %v1331_v37  ;;  %v3295_v40 = vpop.eup %2415  ;;  %2423 = vpow2.f32 %v963_v7 }
 0x207   : > { %1079 = vadd.xlane.f32.xlu1 %v3278_v36  ;;  %2223 = vmatpush3.msra.mxu1 %v1331_v37  ;;  %v1329_v36 = vld [vmem:[#allocation7 + $0x20] sm:$0xff]  ;;  %v3301_v30 = vpop.eup %2417  ;;  %v967_v9 = vmul.f32 1.442695, %v890_v26 }
 0x208   : > { %2224 = vmatprep.subr.mxu1 %v1330_v49  ;;  %v3291_v15 = vpop.xlane.xlu1 %783 }
 0x209   : > { %2225 = vmatpush3.msra.mxu1 %v1330_v49  ;;  %v961_v49 = vmul.f32 1.442695, %v887_v32  ;;  %v1325_v32 = vld [vmem:[#allocation7] sm:$0xff] }
 0x20a   : > { %v3288_v17 = vpop.xlane.xlu0 %785  ;;  %2226 = vmatprep.subr.mxu1 %v1329_v36 }
 0x20b   : > { %1077 = vadd.xlane.f32.xlu1 %v3286_v34  ;;  %2227 = vmatpush3.msra.mxu1 %v1329_v36  ;;  %v1327_v34 = vld [vmem:[#allocation7 + $0x10] sm:$0xff] }
 0x20c   : > { %2228 = vmatprep.subr.mxu1 %v1328_v21  ;;  %v3303_v18 = vpop.xlane.xlu1 %787 }
 0x20d   : > { %2229 = vmatpush3.msra.mxu1 %v1328_v21 }
 0x20e   : > { %v790_v33 = vpop.xlane.xlu0 %789  ;;  %2230 = vmatprep.subr.mxu1 %v1327_v34 }
 0x20f   : > { %v897_v37 = vsub.f32 %v3112_v58, %v790_v33  ;;  %1083 = vadd.xlane.f32.xlu1 %v3295_v40  ;;  %2231 = vmatpush3.msra.mxu1 %v1327_v34  ;;  %v3309_v33 = vpop.eup %2419 }
 0x210   : > { %2232 = vmatprep.subr.mxu1 %v1326_v11 }
 0x211   : > { %v981_v38 = vmul.f32 1.442695, %v897_v37  ;;  %2233 = vmatpush3.msra.mxu1 %v1326_v11  ;;  %v965_v37 = vmul.f32 1.442695, %v889_v44 }
 0x212   : > { %v794_v36 = vpop.xlane.xlu0 %793  ;;  %2234 = vmatprep.subr.mxu1 %v1325_v32  ;;  %v3317_v61 = vpop.eup %2421 }
 0x213   : > { %2425 = vpow2.f32 %v981_v38  ;;  %v899_v58 = vsub.f32 %v3118_v62, %v794_v36  ;;  %1081 = vadd.xlane.f32.xlu1 %v3301_v30  ;;  %2235 = vmatpush3.msra.mxu1 %v1325_v32  ;;  %v3313_v62 = vpop.xlane.xlu1 %791 }
 0x214   : > { %2427 = vpow2.f32 %v961_v49  ;;  %v892_v49 = vsub.f32 %v3097_v48, %v3280_v28 }
 0x215   : > { %v985_v7 = vmul.f32 1.442695, %v899_v58  ;;  %v3323_v58 = vpop.eup %2423 }
 0x216   : > { %v798_v21 = vpop.xlane.xlu0 %797  ;;  %v971_v11 = vmul.f32 1.442695, %v892_v49 }
 0x217   : > { %2429 = vpow2.f32 %v985_v7  ;;  %v901_v34 = vsub.f32 %v3124_v2, %v798_v21  ;;  %1087 = vadd.xlane.f32.xlu1 %v3309_v33  ;;  %v891_v2 = vsub.f32 %v3094_v46, %v3273_v24  ;;  %v3325_v32 = vpop.xlane.xlu1 %795 }
 0x218   : > { %2431 = vpow2.f32 %v967_v9  ;;  %v894_v9 = vsub.f32 %v3103_v52, %v3291_v15 }
 0x219   : > { %v989_v42 = vmul.f32 1.442695, %v901_v34 }
 0x21a   : > { %v802_v26 = vpop.xlane.xlu0 %801  ;;  %v975_v52 = vmul.f32 1.442695, %v894_v9 }
 0x21b   : > { %2433 = vpow2.f32 %v989_v42  ;;  %v903_v38 = vsub.f32 %v3130_v6, %v802_v26  ;;  %1085 = vadd.xlane.f32.xlu1 %v3317_v61  ;;  %v969_v6 = vmul.f32 1.442695, %v891_v2  ;;  %v3340_v34 = vpop.xlane.xlu1 %799  ;;  %v895_v2 = vsub.f32 %v3106_v54, %v3288_v17 }
 0x21c   : > { %2435 = vpow2.f32 %v965_v37  ;;  %v893_v37 = vsub.f32 %v3100_v50, %v3282_v20  ;;  %v896_v54 = vsub.f32 %v3109_v56, %v3303_v18 }
 0x21d   : > { %v993_v36 = vmul.f32 1.442695, %v903_v38 }
 0x21e   : > { %v806_v48 = vpop.xlane.xlu0 %805  ;;  %v973_v38 = vmul.f32 1.442695, %v893_v37  ;;  %v898_v37 = vsub.f32 %v3115_v60, %v3313_v62 }
 0x21f   : > { %2437 = vpow2.f32 %v993_v36  ;;  %v905_v28 = vsub.f32 %v3136_v10, %v806_v48  ;;  %1091 = vadd.xlane.f32.xlu1 %v3323_v58 }
 0x220   : > { %v3329_v44 = vpop.eup %2425  ;;  %2439 = vpow2.f32 %v971_v11  ;;  %v3356_v11 = vpop.xlane.xlu1 %803 }
 0x221   : > { %v997_v46 = vmul.f32 1.442695, %v905_v28  ;;  %1109 = vadd.xlane.f32.xlu0 %v3329_v44  ;;  %v3334_v24 = vpop.eup %2427  ;;  %v977_v28 = vmul.f32 1.442695, %v895_v2 }
 0x222   : > { %v810_v7 = vpop.xlane.xlu0 %809 }
 0x223   : > { %2441 = vpow2.f32 %v997_v46  ;;  %v907_v21 = vsub.f32 %v3142_v14, %v810_v7  ;;  %1089 = vadd.xlane.f32.xlu1 %v3334_v24 }
 0x224   : > { %v3338_v10 = vpop.eup %2429  ;;  %2443 = vpow2.f32 %v969_v6  ;;  %v808_v7 = vpop.xlane.xlu1 %807 }
 0x225   : > { %v1001_v15 = vmul.f32 1.442695, %v907_v21  ;;  %1113 = vadd.xlane.f32.xlu0 %v3338_v10  ;;  %v3345_v49 = vpop.eup %2431  ;;  %v979_v21 = vmul.f32 1.442695, %v896_v54 }
 0x226   : > { %v814_v42 = vpop.xlane.xlu0 %813 }
 0x227   : > { %2445 = vpow2.f32 %v1001_v15  ;;  %v909_v14 = vsub.f32 %v3148_v19, %v814_v42  ;;  %1095 = vadd.xlane.f32.xlu1 %v3345_v49  ;;  %v983_v42 = vmul.f32 1.442695, %v898_v37 }
 0x228   : > { %v3349_v26 = vpop.eup %2433  ;;  %2447 = vpow2.f32 %v975_v52  ;;  %v812_v62 = vpop.xlane.xlu1 %811 }
 0x229   : > { %v1005_v50 = vmul.f32 1.442695, %v909_v14  ;;  %1117 = vadd.xlane.f32.xlu0 %v3349_v26  ;;  %v3354_v20 = vpop.eup %2435  ;;  %v900_v14 = vsub.f32 %v3121_v0, %v3325_v32 }
 0x22a   : > { %v818_v36 = vpop.xlane.xlu0 %817 }
 0x22b   : > { %2449 = vpow2.f32 %v1005_v50  ;;  %v911_v19 = vsub.f32 %v3154_v27, %v818_v36  ;;  %1093 = vadd.xlane.f32.xlu1 %v3354_v20  ;;  %v987_v36 = vmul.f32 1.442695, %v900_v14 }
 0x22c   : > { %v3360_v48 = vpop.eup %2437  ;;  %2451 = vpow2.f32 %v973_v38 }
 0x22d   : > { %v1009_v17 = vmul.f32 1.442695, %v911_v19  ;;  %1121 = vadd.xlane.f32.xlu0 %v3360_v48  ;;  %v3365_v6 = vpop.eup %2439  ;;  %v902_v19 = vsub.f32 %v3127_v4, %v3340_v34 }
 0x22e   : > { %v822_v9 = vpop.xlane.xlu0 %821 }
 0x22f   : > { %2453 = vpow2.f32 %v1009_v17  ;;  %v913_v46 = vsub.f32 %v3160_v35, %v822_v9  ;;  %1099 = vadd.xlane.f32.xlu1 %v3365_v6  ;;  %v816_v17 = vpop.xlane.xlu1 %815  ;;  %v991_v9 = vmul.f32 1.442695, %v902_v19 }
 0x230   : > { %v3369_v27 = vpop.eup %2441  ;;  %2455 = vpow2.f32 %v977_v28  ;;  %v910_v19 = vsub.f32 %v3151_v23, %v816_v17 }
 0x231   : > { %v1013_v56 = vmul.f32 1.442695, %v913_v46  ;;  %1125 = vadd.xlane.f32.xlu0 %v3369_v27  ;;  %v3374_v18 = vpop.eup %2443  ;;  %v904_v46 = vsub.f32 %v3133_v8, %v3356_v11 }
 0x232   : > { %v826_v52 = vpop.xlane.xlu0 %825 }
 0x233   : > { %2457 = vpow2.f32 %v1013_v56  ;;  %v915_v15 = vsub.f32 %v3166_v43, %v826_v52  ;;  %1097 = vadd.xlane.f32.xlu1 %v3374_v18  ;;  %v995_v37 = vmul.f32 1.442695, %v904_v46  ;;  %v906_v56 = vsub.f32 %v3139_v12, %v808_v7  ;;  %v820_v8 = vpop.xlane.xlu1 %819 }
 0x234   : > { %v3378_v35 = vpop.eup %2445  ;;  %2459 = vpow2.f32 %v979_v21 }
 0x235   : > { %v1017_v38 = vmul.f32 1.442695, %v915_v15  ;;  %1129 = vadd.xlane.f32.xlu0 %v3378_v35  ;;  %v3383_v60 = vpop.eup %2447  ;;  %v999_v14 = vmul.f32 1.442695, %v906_v56 }
 0x236   : > { %v830_v2 = vpop.xlane.xlu0 %829 }
 0x237   : > { %2461 = vpow2.f32 %v1017_v38  ;;  %v917_v50 = vsub.f32 %v3172_v51, %v830_v2  ;;  %1103 = vadd.xlane.f32.xlu1 %v3383_v60  ;;  %v908_v38 = vsub.f32 %v3145_v16, %v812_v62 }
 0x238   : > { %v3387_v43 = vpop.eup %2449  ;;  %2463 = vpow2.f32 %v983_v42 }
 0x239   : > { %v1021_v0 = vmul.f32 1.442695, %v917_v50  ;;  %1133 = vadd.xlane.f32.xlu0 %v3387_v43  ;;  %v3392_v32 = vpop.eup %2451 }
 0x23a   : > { %v834_v28 = vpop.xlane.xlu0 %833 }
 0x23b   : > { %2465 = vpow2.f32 %v1021_v0  ;;  %v919_v54 = vsub.f32 %v3178_v59, %v834_v28  ;;  %1101 = vadd.xlane.f32.xlu1 %v3392_v32 }
 0x23c   : > { %v3396_v51 = vpop.eup %2453  ;;  %2467 = vpow2.f32 %v987_v36  ;;  %v1003_v36 = vmul.f32 1.442695, %v908_v38 }
 0x23d   : > { %v1025_v4 = vmul.f32 1.442695, %v919_v54  ;;  %1137 = vadd.xlane.f32.xlu0 %v3396_v51  ;;  %v3401_v34 = vpop.eup %2455  ;;  %v1007_v54 = vmul.f32 1.442695, %v910_v19 }
 0x23e   : > { %v3403_v21 = vpop.xlane.xlu0 %839 }
 0x23f   : > { %2469 = vpow2.f32 %v1025_v4  ;;  %1105 = vadd.xlane.f32.xlu1 %v3401_v34 }
 0x240   : > { %v3406_v59 = vpop.eup %2457  ;;  %2471 = vpow2.f32 %v991_v9  ;;  %v912_v9 = vsub.f32 %v3157_v31, %v820_v8 }
 0x241   : > { %1141 = vadd.xlane.f32.xlu0 %v3406_v59  ;;  %v3410_v52 = vpop.eup %2459  ;;  %2473 = vpow2.f32 %v995_v37 }
 0x242   : > { %v838_v11 = vpop.xlane.xlu0 %837 }
 0x243   : > { %v921_v15 = vsub.f32 %v3188_v5, %v838_v11  ;;  %1107 = vadd.xlane.f32.xlu1 %v3410_v52  ;;  %v824_v5 = vpop.xlane.xlu1 %823 }
 0x244   : > { %v3414_v42 = vpop.eup %2461  ;;  %v914_v37 = vsub.f32 %v3163_v39, %v824_v5 }
 0x245   : > { %v1029_v2 = vmul.f32 1.442695, %v921_v15  ;;  %1145 = vadd.xlane.f32.xlu0 %v3414_v42  ;;  %v3418_v12 = vpop.eup %2463 }
 0x246   : > { %v3420_v7 = vpop.xlane.xlu0 %843 }
 0x247   : > { %2475 = vpow2.f32 %v1029_v2  ;;  %1111 = vadd.xlane.f32.xlu1 %v3418_v12  ;;  %v828_v23 = vpop.xlane.xlu1 %827 }
 0x248   : > { %v3423_v50 = vpop.eup %2465  ;;  %2477 = vpow2.f32 %v999_v14  ;;  %v1015_v14 = vmul.f32 1.442695, %v914_v37  ;;  %v916_v38 = vsub.f32 %v3169_v47, %v828_v23 }
 0x249   : > { %1149 = vadd.xlane.f32.xlu0 %v3423_v50  ;;  %v3427_v16 = vpop.eup %2467  ;;  %2479 = vpow2.f32 %v1003_v36 }
 0x24a   : > { %v842_v62 = vpop.xlane.xlu0 %841 }
 0x24b   : > { %v923_v0 = vsub.f32 %v3194_v13, %v842_v62  ;;  %1115 = vadd.xlane.f32.xlu1 %v3427_v16  ;;  %v1011_v13 = vmul.f32 1.442695, %v912_v9  ;;  %v832_v15 = vpop.xlane.xlu1 %831 }
 0x24c   : > { %v3431_v28 = vpop.eup %2469  ;;  %v918_v5 = vsub.f32 %v3175_v55, %v832_v15 }
 0x24d   : > { %v1033_v46 = vmul.f32 1.442695, %v923_v0  ;;  %1153 = vadd.xlane.f32.xlu0 %v3431_v28  ;;  %v3435_v4 = vpop.eup %2471 }
 0x24e   : > { %v3437_v17 = vpop.xlane.xlu0 %847  ;;  %v3441_v56 = vpop.eup %2473  ;;  %v1023_v9 = vmul.f32 1.442695, %v918_v5 }
 0x24f   : > { %2481 = vpow2.f32 %v1033_v46  ;;  %1119 = vadd.xlane.f32.xlu1 %v3435_v4  ;;  %v836_v62 = vpop.xlane.xlu1 %835 }
 0x250   : > { %2483 = vpow2.f32 %v1007_v54  ;;  %v920_v46 = vsub.f32 %v3181_v63, %v836_v62 }
 0x251   : > { %2485 = vpow2.f32 %v1011_v13 }
 0x252   : > { %v846_v11 = vpop.xlane.xlu0 %845  ;;  %v1027_v37 = vmul.f32 1.442695, %v920_v46 }
 0x253   : > { %v925_v31 = vsub.f32 %v3200_v25, %v846_v11  ;;  %1123 = vadd.xlane.f32.xlu1 %v3441_v56  ;;  %v1019_v25 = vmul.f32 1.442695, %v916_v38  ;;  %v3791_v38 = vld [vmem:[#allocation12_spill] sm:$0xff] }
 0x254   : > { %v3445_v8 = vpop.eup %2475 }
 0x255   : > { %v1037_v2 = vmul.f32 1.442695, %v925_v31  ;;  %1157 = vadd.xlane.f32.xlu0 %v3445_v8  ;;  %v3449_v36 = vpop.eup %2477 }
 0x256   : > { %v852_v39 = vpop.xlane.xlu0 %851  ;;  %v3453_v19 = vpop.eup %2479 }
 0x257   : > { %2487 = vpow2.f32 %v1037_v2  ;;  %1127 = vadd.xlane.f32.xlu1 %v3449_v36  ;;  %v924_v2 = vsub.f32 %v3791_v38, %v3420_v7  ;;  %v3795_v38 = vld [vmem:[#allocation15_spill] sm:$0xff] }
 0x258   : > { %2489 = vpow2.f32 %v1015_v14 }
 0x259   : > { %2491 = vpow2.f32 %v1019_v25 }
 0x25a   : > { %v850_v0 = vpop.xlane.xlu0 %849 }
 0x25b   : > { %v927_v54 = vsub.f32 %v3206_v41, %v850_v0  ;;  %1131 = vadd.xlane.f32.xlu1 %v3453_v19  ;;  %v922_v41 = vsub.f32 %v3183_v1, %v3403_v21  ;;  %v3792_v21 = vld [vmem:[#allocation13_spill] sm:$0xff] }
 0x25c   : > { %v3457_v47 = vpop.eup %2481  ;;  %v926_v62 = vsub.f32 %v3792_v21, %v3437_v17 }
 0x25d   : > { %v1041_v23 = vmul.f32 1.442695, %v927_v54  ;;  %1161 = vadd.xlane.f32.xlu0 %v3457_v47  ;;  %v3461_v13 = vpop.eup %2483  ;;  %v1031_v14 = vmul.f32 1.442695, %v922_v41 }
 0x25e   : > { %v856_v55 = vpop.xlane.xlu0 %855  ;;  %v3466_v11 = vpop.eup %2485 }
 0x25f   : > { %2493 = vpow2.f32 %v1041_v23  ;;  %1135 = vadd.xlane.f32.xlu1 %v3461_v13  ;;  %v1039_v23 = vmul.f32 1.442695, %v926_v62 }
 0x260   : > { %2495 = vpow2.f32 %v1023_v9  ;;  %v3793_v9 = vld [vmem:[#allocation17_spill] sm:$0xff] }
 0x261   : > { %2497 = vpow2.f32 %v1027_v37  ;;  %v3794_v37 = vld [vmem:[#allocation14_spill] sm:$0xff] }
 0x262   : > { %v854_v31 = vpop.xlane.xlu0 %853  ;;  %v928_v41 = vsub.f32 %v3794_v37, %v852_v39 }
 0x263   : > { %v929_v15 = vsub.f32 %v3212_v57, %v854_v31  ;;  %1139 = vadd.xlane.f32.xlu1 %v3466_v11  ;;  %v1035_v57 = vmul.f32 1.442695, %v924_v2  ;;  %v930_v2 = vsub.f32 %v3795_v38, %v856_v55 }
 0x264   : > { %v3470_v63 = vpop.eup %2487  ;;  %v1043_v17 = vmul.f32 1.442695, %v928_v41 }
 0x265   : > { %v1045_v25 = vmul.f32 1.442695, %v929_v15  ;;  %1165 = vadd.xlane.f32.xlu0 %v3470_v63  ;;  %v3475_v5 = vpop.eup %2489  ;;  %v1047_v62 = vmul.f32 1.442695, %v930_v2 }
 0x266   : > { %v860_v1 = vpop.xlane.xlu0 %859  ;;  %v3480_v0 = vpop.eup %2491 }
 0x267   : > { %2499 = vpow2.f32 %v1045_v25  ;;  %1143 = vadd.xlane.f32.xlu1 %v3475_v5 }
 0x268   : > { %2501 = vpow2.f32 %v1031_v14 }
 0x269   : > { %2503 = vpow2.f32 %v1035_v57 }
 0x26a   : > { %v858_v54 = vpop.xlane.xlu0 %857 }
 0x26b   : > { %v931_v46 = vsub.f32 %v3793_v9, %v858_v54  ;;  %1147 = vadd.xlane.f32.xlu1 %v3480_v0  ;;  %v3796_v54 = vld [vmem:[#allocation16_spill] sm:$0xff] }
 0x26c   : > { %v3484_v7 = vpop.eup %2493  ;;  %v932_v9 = vsub.f32 %v3796_v54, %v860_v1 }
 0x26d   : > { %v1049_v31 = vmul.f32 1.442695, %v931_v46  ;;  %1169 = vadd.xlane.f32.xlu0 %v3484_v7  ;;  %v3488_v15 = vpop.eup %2495 }
 0x26e   : > { %v864_v14 = vpop.xlane.xlu0 %863  ;;  %v3492_v25 = vpop.eup %2497  ;;  %v1051_v55 = vmul.f32 1.442695, %v932_v9 }
 0x26f   : > { %2505 = vpow2.f32 %v1049_v31  ;;  %1151 = vadd.xlane.f32.xlu1 %v3488_v15 }
 0x270   : > { %2507 = vpow2.f32 %v1039_v23 }
 0x271   : > { %2509 = vpow2.f32 %v1043_v17 }
 0x272   : > { %v862_v21 = vpop.xlane.xlu0 %861 }
 0x273   : > { %v933_v57 = vsub.f32 %v3225_v53, %v862_v21  ;;  %1155 = vadd.xlane.f32.xlu1 %v3492_v25  ;;  %v3797_v53 = vld [vmem:[#allocation18_spill] sm:$0xff] }
 0x274   : > { %v3496_v39 = vpop.eup %2499  ;;  %v934_v41 = vsub.f32 %v3797_v53, %v864_v14 }
 0x275   : > { %v1053_v46 = vmul.f32 1.442695, %v933_v57  ;;  %1173 = vadd.xlane.f32.xlu0 %v3496_v39  ;;  %v3500_v23 = vpop.eup %2501 }
 0x276   : > { %v868_v37 = vpop.xlane.xlu0 %867  ;;  %v3504_v31 = vpop.eup %2503  ;;  %v1055_v21 = vmul.f32 1.442695, %v934_v41 }
 0x277   : > { %2511 = vpow2.f32 %v1053_v46  ;;  %1159 = vadd.xlane.f32.xlu1 %v3500_v23  ;;  %v936_v17 = vsub.f32 %v3229_v3, %v868_v37  ;;  %v3799_v3 = vld [vmem:[#allocation19_spill] sm:$0xff] }
 0x278   : > { %2513 = vpow2.f32 %v1047_v62 }
 0x279   : > { %2515 = vpow2.f32 %v1051_v55  ;;  %v1059_v14 = vmul.f32 1.442695, %v936_v17  ;;  %v3800_v55 = vld [vmem:[#allocation21_spill] sm:$0xff] }
 0x27a   : > { %v866_v38 = vpop.xlane.xlu0 %865 }
 0x27b   : > { %v935_v1 = vsub.f32 %v3234_v22, %v866_v38  ;;  %1163 = vadd.xlane.f32.xlu1 %v3504_v31 }
 0x27c   : > { %v3509_v2 = vpop.eup %2505 }
 0x27d   : > { %3798 = vst [vmem:[#allocation12_spill] sm:$0xff] %v3509_v2  ;;  %v1057_v57 = vmul.f32 1.442695, %v935_v1  ;;  %1177 = vadd.xlane.f32.xlu0 %v3509_v2  ;;  %v3512_v62 = vpop.eup %2507  ;;  %v3814_v2 = vld [vmem:[#allocation25_spill] sm:$0xff] }
 0x27e   : > { %v872_v54 = vpop.xlane.xlu0 %871  ;;  %v3516_v46 = vpop.eup %2509 }
 0x27f   : > { %2517 = vpow2.f32 %v1057_v57  ;;  %1167 = vadd.xlane.f32.xlu1 %v3512_v62  ;;  %v938_v22 = vsub.f32 %v3799_v3, %v872_v54 }
 0x280   : > { %v1072_v9 = vpop.xlane.xlu1 %1071  ;;  %2519 = vpow2.f32 %v1055_v21 }
 0x281   : > { %2521 = vpow2.f32 %v1059_v14  ;;  %v1063_v17 = vmul.f32 1.442695, %v938_v22 }
 0x282   : > { %v870_v37 = vpop.xlane.xlu0 %869  ;;  %2523 = vrcp.f32 %v1072_v9 }
 0x283   : > { %v937_v53 = vsub.f32 %v3800_v55, %v870_v37  ;;  %1171 = vadd.xlane.f32.xlu1 %v3516_v46 }
 0x284   : > { %v3520_v41 = vpop.eup %2511  ;;  %v1070_v38 = vpop.xlane.xlu1 %1069 }
 0x285   : > { %3801 = vst [vmem:[#allocation13_spill] sm:$0xff] %v3520_v41  ;;  %v1061_v1 = vmul.f32 1.442695, %v937_v53  ;;  %2525 = vrcp.f32 %v1070_v38  ;;  %1181 = vadd.xlane.f32.xlu0 %v3520_v41  ;;  %v3523_v21 = vpop.eup %2513 }
 0x286   : > { %v876_v57 = vpop.xlane.xlu0 %875  ;;  %v3527_v37 = vpop.eup %2515 }
 0x287   : > { %2527 = vpow2.f32 %v1061_v1  ;;  %v940_v54 = vsub.f32 %v3250_v45, %v876_v57  ;;  %1175 = vadd.xlane.f32.xlu1 %v3523_v21  ;;  %3802 = vst [vmem:[#allocation17_spill] sm:$0xff] %v3527_v37 }
 0x288   : > { %v1076_v14 = vpop.xlane.xlu1 %1075  ;;  %2529 = vpow2.f32 %v1063_v17 }
 0x289   : > { %v1067_v3 = vmul.f32 1.442695, %v940_v54  ;;  %2531 = vrcp.f32 %v1076_v14  ;;  %v3806_v54 = vld [vmem:[#allocation22_spill] sm:$0xff] }
 0x28a   : > { %v874_v9 = vpop.xlane.xlu0 %873 }
 0x28b   : > { %v939_v22 = vsub.f32 %v3264_v29, %v874_v9  ;;  %1179 = vadd.xlane.f32.xlu1 %v3527_v37  ;;  %2533 = vpow2.f32 %v1067_v3 }
 0x28c   : > { %v3531_v55 = vpop.eup %2517  ;;  %v1074_v53 = vpop.xlane.xlu1 %1073 }
 0x28d   : > { %3803 = vst [vmem:[#allocation14_spill] sm:$0xff] %v3531_v55  ;;  %v1065_v38 = vmul.f32 1.442695, %v939_v22  ;;  %2535 = vrcp.f32 %v1074_v53  ;;  %1185 = vadd.xlane.f32.xlu0 %v3531_v55  ;;  %v3534_v45 = vpop.eup %2519  ;;  %v3808_v22 = vld [vmem:[#allocation20_spill] sm:$0xff] }
 0x28e   : > { %3804 = vst [vmem:[#allocation15_spill] sm:$0xff] %v3534_v45  ;;  %v3537_v17 = vpop.eup %2521 }
 0x28f   : > { %2537 = vpow2.f32 %v1065_v38  ;;  %1183 = vadd.xlane.f32.xlu1 %v3534_v45  ;;  %3805 = vst [vmem:[#allocation16_spill] sm:$0xff] %v3537_v17  ;;  %v2524_v57 = vpop.eup %2523 }
 0x290   : > { %v1080_v1 = vpop.xlane.xlu1 %1079  ;;  %v1262_v53 = vmul.f32 %v2524_v57, %v3808_v22 }
 0x291   : > { %2539 = vrcp.f32 %v1080_v1  ;;  %v3811_v1 = vld [vmem:[#allocation24_spill] sm:$0xff] }
 0x292   : > { %v2526_v29 = vpop.eup %2525 }
 0x293   : > { %1187 = vadd.xlane.f32.xlu1 %v3537_v17  ;;  %v1261_v14 = vmul.f32 %v2526_v29, %v3806_v54 }
 0x294   : > { %v3541_v3 = vpop.eup %2527  ;;  %v1078_v9 = vpop.xlane.xlu1 %1077 }
 0x295   : > { %3807 = vst [vmem:[#allocation18_spill] sm:$0xff] %v3541_v3  ;;  %2541 = vrcp.f32 %v1078_v9  ;;  %2236 = vmatprep.mubr.f32.mxu1 %v1261_v14  ;;  %1189 = vadd.xlane.f32.xlu0 %v3541_v3  ;;  %v3545_v38 = vpop.eup %2529  ;;  %v3812_v14 = vld [vmem:[#allocation23_spill] sm:$0xff]  ;;  %v3813_v3 = vld [vmem:[#allocation26_spill] sm:$0xff] }
 0x296   : > { %3809 = vst [vmem:[#allocation19_spill] sm:$0xff] %v3545_v38  ;;  %2237 = vmatmul.mubr.f32.vlgmr.msra.gmra.mxu1 %v1262_v53  ;;  %v2532_v55 = vpop.eup %2531 }
 0x297   : > { %1191 = vadd.xlane.f32.xlu1 %v3545_v38  ;;  %v1264_v9 = vmul.f32 %v2532_v55, %v3812_v14 }
 0x298   : > { %v1084_v45 = vpop.xlane.xlu1 %1083  ;;  %v3548_v17 = vpop.eup %2533 }
 0x299   : > { %3810 = vst [vmem:[#allocation21_spill] sm:$0xff] %v3548_v17  ;;  %2543 = vrcp.f32 %v1084_v45 }
 0x29a   : > { %v2536_v29 = vpop.eup %2535 }
 0x29b   : > { %1195 = vadd.xlane.f32.xlu1 %v3548_v17  ;;  %v1263_v54 = vmul.f32 %v2536_v29, %v3811_v1 }
 0x29c   : > { %v3552_v41 = vpop.eup %2537  ;;  %v1082_v57 = vpop.xlane.xlu1 %1081 }
 0x29d   : > { %2545 = vrcp.f32 %v1082_v57  ;;  %2239 = vmatprep.mubr.f32.mxu1 %v1263_v54  ;;  %1193 = vadd.xlane.f32.xlu0 %v3552_v41 }
 0x29e   : > { %2240 = vmatmul.mubr.f32.gmra.mxu1 %v1264_v9  ;;  %v2540_v53 = vpop.eup %2539 }
 0x29f   : > { %v1266_v29 = vmul.f32 %v2540_v53, %v3814_v2 }
 0x2a0   : > { %v1088_v22 = vpop.xlane.xlu1 %1087 }
 0x2a1   : > { %2547 = vrcp.f32 %v1088_v22 }
 0x2a2   : > { %v2542_v38 = vpop.eup %2541 }
 0x2a3   : > { %v1265_v37 = vmul.f32 %v2542_v38, %v3813_v3 }
 0x2a4   : > { %v1086_v17 = vpop.xlane.xlu1 %1085 }
 0x2a5   : > { %2549 = vrcp.f32 %v1086_v17  ;;  %2242 = vmatprep.mubr.f32.mxu1 %v1265_v37 }
 0x2a6   : > { %2243 = vmatmul.mubr.f32.gmra.mxu1 %v1266_v29  ;;  %v2544_v1 = vpop.eup %2543 }
 0x2a7   : > { %v1268_v14 = vmul.f32 %v2544_v1, %v3295_v40 }
 0x2a8   : > { %v1092_v45 = vpop.xlane.xlu1 %1091 }
 0x2a9   : > { %2551 = vrcp.f32 %v1092_v45 }
 0x2aa   : > { %v2546_v55 = vpop.eup %2545  ;;  %v1110_v22 = vpop.xlane.xlu0 %1109 }
 0x2ab   : > { %v1267_v54 = vmul.f32 %v2546_v55, %v3301_v30 }
 0x2ac   : > { %v1090_v57 = vpop.xlane.xlu1 %1089 }
 0x2ad   : > { %2553 = vrcp.f32 %v1090_v57  ;;  %2245 = vmatprep.mubr.f32.mxu1 %v1267_v54 }
 0x2ae   : > { %2246 = vmatmul.mubr.f32.gmra.mxu1 %v1268_v14  ;;  %v2548_v38 = vpop.eup %2547  ;;  %v1114_v29 = vpop.xlane.xlu0 %1113 }
 0x2af   : > { %v1270_v17 = vmul.f32 %v2548_v38, %v3309_v33 }
 0x2b0   : > { %v1096_v3 = vpop.xlane.xlu1 %1095 }
 0x2b1   : > { %2555 = vrcp.f32 %v1096_v3 }
 0x2b2   : > { %v2550_v9 = vpop.eup %2549 }
 0x2b3   : > { %v1269_v2 = vmul.f32 %v2550_v9, %v3317_v61  ;;  %v1118_v61 = vpop.xlane.xlu0 %1117 }
 0x2b4   : > { %v1094_v37 = vpop.xlane.xlu1 %1093 }
 0x2b5   : > { %2557 = vrcp.f32 %v1094_v37  ;;  %2248 = vmatprep.mubr.f32.mxu1 %v1269_v2 }
 0x2b6   : > { %2249 = vmatmul.mubr.f32.gmra.mxu1 %v1270_v17  ;;  %v2552_v53 = vpop.eup %2551 }
 0x2b7   : > { %v1272_v55 = vmul.f32 %v2552_v53, %v3323_v58  ;;  %v1122_v9 = vpop.xlane.xlu0 %1121 }
 0x2b8   : > { %v1100_v30 = vpop.xlane.xlu1 %1099 }
 0x2b9   : > { %2559 = vrcp.f32 %v1100_v30 }
 0x2ba   : > { %v2554_v40 = vpop.eup %2553 }
 0x2bb   : > { %v1271_v45 = vmul.f32 %v2554_v40, %v3334_v24  ;;  %v1126_v37 = vpop.xlane.xlu0 %1125 }
 0x2bc   : > { %v1098_v1 = vpop.xlane.xlu1 %1097 }
 0x2bd   : > { %2561 = vrcp.f32 %v1098_v1  ;;  %2251 = vmatprep.mubr.f32.mxu1 %v1271_v45 }
 0x2be   : > { %2252 = vmatmul.mubr.f32.gmra.mxu1 %v1272_v55  ;;  %v2556_v57 = vpop.eup %2555 }
 0x2bf   : > { %v1274_v38 = vmul.f32 %v2556_v57, %v3345_v49  ;;  %v1130_v40 = vpop.xlane.xlu0 %1129 }
 0x2c0   : > { %v1104_v54 = vpop.xlane.xlu1 %1103 }
 0x2c1   : > { %2563 = vrcp.f32 %v1104_v54 }
 0x2c2   : > { %v2558_v33 = vpop.eup %2557 }
 0x2c3   : > { %v1273_v14 = vmul.f32 %v2558_v33, %v3354_v20 }
 0x2c4   : > { %v1102_v3 = vpop.xlane.xlu1 %1101 }
 0x2c5   : > { %2565 = vrcp.f32 %v1102_v3  ;;  %2254 = vmatprep.mubr.f32.mxu1 %v1273_v14 }
 0x2c6   : > { %2255 = vmatmul.mubr.f32.gmra.mxu1 %v1274_v38  ;;  %v2560_v2 = vpop.eup %2559 }
 0x2c7   : > { %v1276_v53 = vmul.f32 %v2560_v2, %v3365_v6  ;;  %v1134_v6 = vpop.xlane.xlu0 %1133 }
 0x2c8   : > { %v1106_v24 = vpop.xlane.xlu1 %1105 }
 0x2c9   : > { %2567 = vrcp.f32 %v1106_v24 }
 0x2ca   : > { %v2562_v58 = vpop.eup %2561  ;;  %2569 = vrcp.f32 %v1110_v22 }
 0x2cb   : > { %v1275_v17 = vmul.f32 %v2562_v58, %v3374_v18  ;;  %v1138_v3 = vpop.xlane.xlu0 %1137 }
 0x2cc   : > { %v1108_v30 = vpop.xlane.xlu1 %1107 }
 0x2cd   : > { %2571 = vrcp.f32 %v1108_v30  ;;  %2257 = vmatprep.mubr.f32.mxu1 %v1275_v17 }
 0x2ce   : > { %2258 = vmatmul.mubr.f32.gmra.mxu1 %v1276_v53  ;;  %2573 = vrcp.f32 %v1114_v29  ;;  %v2564_v20 = vpop.eup %2563 }
 0x2cf   : > { %v1278_v54 = vmul.f32 %v2564_v20, %v3383_v60  ;;  %v1142_v58 = vpop.xlane.xlu0 %1141 }
 0x2d0   : > { %v1112_v49 = vpop.xlane.xlu1 %1111 }
 0x2d1   : > { %2575 = vrcp.f32 %v1112_v49 }
 0x2d2   : > { %v2566_v45 = vpop.eup %2565  ;;  %2577 = vrcp.f32 %v1118_v61 }
 0x2d3   : > { %v1277_v1 = vmul.f32 %v2566_v45, %v3392_v32 }
 0x2d4   : > { %v1116_v55 = vpop.xlane.xlu1 %1115 }
 0x2d5   : > { %2579 = vrcp.f32 %v1116_v55  ;;  %2260 = vmatprep.mubr.f32.mxu1 %v1277_v1 }
 0x2d6   : > { %v2568_v18 = vpop.eup %2567  ;;  %2261 = vmatmul.mubr.f32.gmra.mxu1 %v1278_v54  ;;  %2581 = vrcp.f32 %v1122_v9 }
 0x2d7   : > { %v1279_v22 = vmul.f32 %v2568_v18, %v3401_v34  ;;  %v2570_v57 = vpop.eup %2569 }
 0x2d8   : > { %v1120_v29 = vpop.xlane.xlu1 %1119  ;;  %v1281_v61 = vmul.f32 %v2570_v57, %v3329_v44 }
 0x2d9   : > { %2583 = vrcp.f32 %v1120_v29  ;;  %2263 = vmatprep.mubr.f32.mxu1 %v1279_v22 }
 0x2da   : > { %v2572_v33 = vpop.eup %2571  ;;  %2585 = vrcp.f32 %v1126_v37 }
 0x2db   : > { %v1280_v14 = vmul.f32 %v2572_v33, %v3410_v52  ;;  %v2574_v60 = vpop.eup %2573 }
 0x2dc   : > { %v1124_v32 = vpop.xlane.xlu1 %1123  ;;  %v1283_v24 = vmul.f32 %v2574_v60, %v3338_v10 }
 0x2dd   : > { %2587 = vrcp.f32 %v1124_v32  ;;  %2264 = vmatmul.mubr.f32.gmra.mxu1 %v1280_v14 }
 0x2de   : > { %v2576_v38 = vpop.eup %2575  ;;  %2266 = vmatprep.mubr.f32.mxu1 %v1281_v61  ;;  %2589 = vrcp.f32 %v1130_v40  ;;  %v1146_v40 = vpop.xlane.xlu0 %1145 }
 0x2df   : > { %v1282_v34 = vmul.f32 %v2576_v38, %v3418_v12  ;;  %v2578_v2 = vpop.eup %2577 }
 0x2e0   : > { %v1128_v9 = vpop.xlane.xlu1 %1127  ;;  %v1285_v17 = vmul.f32 %v2578_v2, %v3349_v26 }
 0x2e1   : > { %2591 = vrcp.f32 %v1128_v9  ;;  %2267 = vmatmul.mubr.f32.gmra.mxu1 %v1282_v34 }
 0x2e2   : > { %v2580_v52 = vpop.eup %2579  ;;  %2269 = vmatprep.mubr.f32.mxu1 %v1283_v24  ;;  %2593 = vrcp.f32 %v1134_v6  ;;  %v1150_v54 = vpop.xlane.xlu0 %1149 }
 0x2e3   : > { %v1284_v44 = vmul.f32 %v2580_v52, %v3427_v16  ;;  %v2582_v30 = vpop.eup %2581 }
 0x2e4   : > { %v1132_v37 = vpop.xlane.xlu1 %1131  ;;  %v1287_v49 = vmul.f32 %v2582_v30, %v3360_v48 }
 0x2e5   : > { %2595 = vrcp.f32 %v1132_v37  ;;  %2270 = vmatmul.mubr.f32.gmra.mxu1 %v1284_v44 }
 0x2e6   : > { %v2584_v12 = vpop.eup %2583  ;;  %2272 = vmatprep.mubr.f32.mxu1 %v1285_v17  ;;  %2597 = vrcp.f32 %v1138_v3  ;;  %v1154_v14 = vpop.xlane.xlu0 %1153 }
 0x2e7   : > { %v1286_v53 = vmul.f32 %v2584_v12, %v3435_v4  ;;  %v2586_v20 = vpop.eup %2585 }
 0x2e8   : > { %v1136_v10 = vpop.xlane.xlu1 %1135  ;;  %v1289_v1 = vmul.f32 %v2586_v20, %v3369_v27 }
 0x2e9   : > { %2599 = vrcp.f32 %v1136_v10  ;;  %2273 = vmatmul.mubr.f32.gmra.mxu1 %v1286_v53 }
 0x2ea   : > { %v2588_v16 = vpop.eup %2587  ;;  %2275 = vmatprep.mubr.f32.mxu1 %v1287_v49  ;;  %2601 = vrcp.f32 %v1142_v58  ;;  %v1158_v3 = vpop.xlane.xlu0 %1157 }
 0x2eb   : > { %v1288_v45 = vmul.f32 %v2588_v16, %v3441_v56  ;;  %v2590_v55 = vpop.eup %2589 }
 0x2ec   : > { %v1140_v26 = vpop.xlane.xlu1 %1139  ;;  %v1291_v6 = vmul.f32 %v2590_v55, %v3378_v35 }
 0x2ed   : > { %2603 = vrcp.f32 %v1140_v26  ;;  %2276 = vmatmul.mubr.f32.gmra.mxu1 %v1288_v45 }
 0x2ee   : > { %v2592_v4 = vpop.eup %2591  ;;  %2278 = vmatprep.mubr.f32.mxu1 %v1289_v1  ;;  %2605 = vrcp.f32 %v1146_v40  ;;  %v1162_v24 = vpop.xlane.xlu0 %1161 }
 0x2ef   : > { %v1290_v48 = vmul.f32 %v2592_v4, %v3449_v36  ;;  %v2594_v22 = vpop.eup %2593 }
 0x2f0   : > { %v1144_v18 = vpop.xlane.xlu1 %1143  ;;  %v1293_v57 = vmul.f32 %v2594_v22, %v3387_v43 }
 0x2f1   : > { %2607 = vrcp.f32 %v1144_v18  ;;  %2279 = vmatmul.mubr.f32.gmra.mxu1 %v1290_v48 }
 0x2f2   : > { %v2596_v56 = vpop.eup %2595  ;;  %2281 = vmatprep.mubr.f32.mxu1 %v1291_v6  ;;  %2609 = vrcp.f32 %v1150_v54  ;;  %v1166_v44 = vpop.xlane.xlu0 %1165 }
 0x2f3   : > { %v1292_v29 = vmul.f32 %v2596_v56, %v3453_v19  ;;  %v2598_v33 = vpop.eup %2597 }
 0x2f4   : > { %v1148_v27 = vpop.xlane.xlu1 %1147  ;;  %v1295_v61 = vmul.f32 %v2598_v33, %v3396_v51 }
 0x2f5   : > { %2611 = vrcp.f32 %v1148_v27  ;;  %2282 = vmatmul.mubr.f32.gmra.mxu1 %v1292_v29 }
 0x2f6   : > { %v2600_v36 = vpop.eup %2599  ;;  %2284 = vmatprep.mubr.f32.mxu1 %v1293_v57  ;;  %2613 = vrcp.f32 %v1154_v14  ;;  %v1170_v12 = vpop.xlane.xlu0 %1169 }
 0x2f7   : > { %v1294_v32 = vmul.f32 %v2600_v36, %v3461_v13  ;;  %v2602_v60 = vpop.eup %2601 }
 0x2f8   : > { %v1152_v35 = vpop.xlane.xlu1 %1151  ;;  %v1297_v34 = vmul.f32 %v2602_v60, %v3406_v59 }
 0x2f9   : > { %2615 = vrcp.f32 %v1152_v35  ;;  %2285 = vmatmul.mubr.f32.gmra.mxu1 %v1294_v32  ;;  %v3815_v35 = vld [vmem:[#allocation12_spill] sm:$0xff] }
 0x2fa   : > { %v2604_v19 = vpop.eup %2603  ;;  %2287 = vmatprep.mubr.f32.mxu1 %v1295_v61  ;;  %2617 = vrcp.f32 %v1158_v3 }
 0x2fb   : > { %v1296_v43 = vmul.f32 %v2604_v19, %v3466_v11  ;;  %v2606_v9 = vpop.eup %2605 }
 0x2fc   : > { %v1156_v38 = vpop.xlane.xlu1 %1155  ;;  %v1299_v52 = vmul.f32 %v2606_v9, %v3414_v42 }
 0x2fd   : > { %2619 = vrcp.f32 %v1156_v38  ;;  %2288 = vmatmul.mubr.f32.gmra.mxu1 %v1296_v43  ;;  %v3817_v43 = vld [vmem:[#allocation13_spill] sm:$0xff] }
 0x2fe   : > { %v2608_v13 = vpop.eup %2607  ;;  %2290 = vmatprep.mubr.f32.mxu1 %v1297_v34  ;;  %2621 = vrcp.f32 %v1162_v24  ;;  %v1174_v20 = vpop.xlane.xlu0 %1173 }
 0x2ff   : > { %v1298_v51 = vmul.f32 %v2608_v13, %v3475_v5  ;;  %v2610_v58 = vpop.eup %2609 }
 0x300   : > { %v1160_v2 = vpop.xlane.xlu1 %1159  ;;  %v1301_v17 = vmul.f32 %v2610_v58, %v3423_v50  ;;  %v3820_v58 = vld [vmem:[#allocation16_spill] sm:$0xff] }
 0x301   : > { %2623 = vrcp.f32 %v1160_v2  ;;  %2291 = vmatmul.mubr.f32.gmra.mxu1 %v1298_v51  ;;  %v3819_v51 = vld [vmem:[#allocation14_spill] sm:$0xff] }
 0x302   : > { %v2612_v11 = vpop.eup %2611  ;;  %2293 = vmatprep.mubr.f32.mxu1 %v1299_v52  ;;  %2625 = vrcp.f32 %v1166_v44 }
 0x303   : > { %v1300_v59 = vmul.f32 %v2612_v11, %v3480_v0  ;;  %v2614_v30 = vpop.eup %2613 }
 0x304   : > { %v1164_v37 = vpop.xlane.xlu1 %1163  ;;  %v1303_v10 = vmul.f32 %v2614_v30, %v3431_v28  ;;  %v3822_v30 = vld [vmem:[#allocation19_spill] sm:$0xff] }
 0x305   : > { %2627 = vrcp.f32 %v1164_v37  ;;  %2294 = vmatmul.mubr.f32.gmra.mxu1 %v1300_v59  ;;  %v3821_v59 = vld [vmem:[#allocation18_spill] sm:$0xff] }
 0x306   : > { %v2616_v5 = vpop.eup %2615  ;;  %2296 = vmatprep.mubr.f32.mxu1 %v1301_v17  ;;  %2629 = vrcp.f32 %v1170_v12  ;;  %v1178_v26 = vpop.xlane.xlu0 %1177 }
 0x307   : > { %v1302_v42 = vmul.f32 %v2616_v5, %v3488_v15  ;;  %v2618_v49 = vpop.eup %2617 }
 0x308   : > { %v1168_v53 = vpop.xlane.xlu1 %1167  ;;  %v1305_v16 = vmul.f32 %v2618_v49, %v3445_v8 }
 0x309   : > { %2631 = vrcp.f32 %v1168_v53  ;;  %2297 = vmatmul.mubr.f32.gmra.mxu1 %v1302_v42 }
 0x30a   : > { %v2620_v0 = vpop.eup %2619  ;;  %2299 = vmatprep.mubr.f32.mxu1 %v1303_v10  ;;  %2633 = vrcp.f32 %v1174_v20  ;;  %v3823_v10 = vld [vmem:[#allocation21_spill] sm:$0xff] }
 0x30b   : > { %v1304_v50 = vmul.f32 %v2620_v0, %v3492_v25  ;;  %v2622_v45 = vpop.eup %2621 }
 0x30c   : > { %v1172_v40 = vpop.xlane.xlu1 %1171  ;;  %v1307_v55 = vmul.f32 %v2622_v45, %v3457_v47 }
 0x30d   : > { %2635 = vrcp.f32 %v1172_v40  ;;  %2300 = vmatmul.mubr.f32.gmra.mxu1 %v1304_v50 }
 0x30e   : > { %v2624_v15 = vpop.eup %2623  ;;  %2302 = vmatprep.mubr.f32.mxu1 %v1305_v16  ;;  %2637 = vrcp.f32 %v1178_v26  ;;  %v1182_v54 = vpop.xlane.xlu0 %1181 }
 0x30f   : > { %v1306_v28 = vmul.f32 %v2624_v15, %v3500_v23  ;;  %v2626_v4 = vpop.eup %2625 }
 0x310   : > { %v1176_v1 = vpop.xlane.xlu1 %1175  ;;  %v1309_v18 = vmul.f32 %v2626_v4, %v3470_v63 }
 0x311   : > { %2639 = vrcp.f32 %v1176_v1  ;;  %2303 = vmatmul.mubr.f32.gmra.mxu1 %v1306_v28 }
 0x312   : > { %v2628_v25 = vpop.eup %2627  ;;  %2305 = vmatprep.mubr.f32.mxu1 %v1307_v55  ;;  %2641 = vrcp.f32 %v1182_v54 }
 0x313   : > { %v1308_v8 = vmul.f32 %v2628_v25, %v3504_v31  ;;  %v2630_v6 = vpop.eup %2629 }
 0x314   : > { %v1180_v48 = vpop.xlane.xlu1 %1179  ;;  %v1311_v29 = vmul.f32 %v2630_v6, %v3484_v7 }
 0x315   : > { %2643 = vrcp.f32 %v1180_v48  ;;  %2306 = vmatmul.mubr.f32.gmra.mxu1 %v1308_v8 }
 0x316   : > { %v2632_v23 = vpop.eup %2631  ;;  %2308 = vmatprep.mubr.f32.mxu1 %v1309_v18  ;;  %v1186_v22 = vpop.xlane.xlu0 %1185 }
 0x317   : > { %v1310_v47 = vmul.f32 %v2632_v23, %v3512_v62  ;;  %2645 = vrcp.f32 %v1186_v22  ;;  %v2634_v27 = vpop.eup %2633 }
 0x318   : > { %v1184_v56 = vpop.xlane.xlu1 %1183  ;;  %v1313_v33 = vmul.f32 %v2634_v27, %v3496_v39 }
 0x319   : > { %2647 = vrcp.f32 %v1184_v56  ;;  %2309 = vmatmul.mubr.f32.gmra.mxu1 %v1310_v47 }
 0x31a   : > { %v2636_v31 = vpop.eup %2635  ;;  %2311 = vmatprep.mubr.f32.mxu1 %v1311_v29 }
 0x31b   : > { %v1312_v57 = vmul.f32 %v2636_v31, %v3516_v46  ;;  %v2638_v14 = vpop.eup %2637  ;;  %v3816_v46 = vld [vmem:[#allocation17_spill] sm:$0xff] }
 0x31c   : > { %v1188_v63 = vpop.xlane.xlu1 %1187  ;;  %v1315_v61 = vmul.f32 %v2638_v14, %v3815_v35 }
 0x31d   : > { %2649 = vrcp.f32 %v1188_v63  ;;  %2312 = vmatmul.mubr.f32.gmra.mxu1 %v1312_v57 }
 0x31e   : > { %v2640_v36 = vpop.eup %2639  ;;  %2314 = vmatprep.mubr.f32.mxu1 %v1313_v33  ;;  %v1190_v62 = vpop.xlane.xlu0 %1189 }
 0x31f   : > { %2651 = vrcp.f32 %v1190_v62  ;;  %v1314_v32 = vmul.f32 %v2640_v36, %v3523_v21  ;;  %v2642_v60 = vpop.eup %2641  ;;  %v3818_v21 = vld [vmem:[#allocation15_spill] sm:$0xff] }
 0x320   : > { %v1192_v7 = vpop.xlane.xlu1 %1191  ;;  %v1317_v38 = vmul.f32 %v2642_v60, %v3817_v43 }
 0x321   : > { %2653 = vrcp.f32 %v1192_v7  ;;  %2315 = vmatmul.mubr.f32.gmra.mxu1 %v1314_v32 }
 0x322   : > { %v2644_v3 = vpop.eup %2643  ;;  %2317 = vmatprep.mubr.f32.mxu1 %v1315_v61 }
 0x323   : > { %v1316_v19 = vmul.f32 %v2644_v3, %v3816_v46 }
 0x324   : > { %v1196_v39 = vpop.xlane.xlu1 %1195  ;;  %v2646_v34 = vpop.eup %2645 }
 0x325   : > { %2318 = vmatmul.mubr.f32.gmra.mxu1 %v1316_v19  ;;  %2655 = vrcp.f32 %v1196_v39  ;;  %v1319_v2 = vmul.f32 %v2646_v34, %v3819_v51 }
 0x326   : > { %v2648_v9 = vpop.eup %2647  ;;  %2320 = vmatprep.mubr.f32.mxu1 %v1317_v38  ;;  %v1194_v24 = vpop.xlane.xlu0 %1193 }
 0x327   : > { %2657 = vrcp.f32 %v1194_v24  ;;  %v1318_v13 = vmul.f32 %v2648_v9, %v3818_v21 }
 0x329   : > { %2321 = vmatmul.mubr.f32.gmra.mxu1 %v1318_v13 }
 0x32a   : > { %v2650_v52 = vpop.eup %2649  ;;  %2323 = vmatprep.mubr.f32.mxu1 %v1319_v2 }
 0x32b   : > { %v1320_v44 = vmul.f32 %v2650_v52, %v3820_v58 }
 0x32c   : > { %v2652_v11 = vpop.eup %2651 }
 0x32d   : > { %2324 = vmatmul.mubr.f32.gmra.mxu1 %v1320_v44  ;;  %v1321_v37 = vmul.f32 %v2652_v11, %v3821_v59 }
 0x32e   : > { %v2654_v17 = vpop.eup %2653 }
 0x32f   : > { %2326 = vmatprep.mubr.f32.mxu1 %v1321_v37  ;;  %v1322_v12 = vmul.f32 %v2654_v17, %v3822_v30 }
 0x331   : > { %2327 = vmatmul.mubr.f32.gmra.mxu1 %v1322_v12 }
 0x332   : > { %v2656_v5 = vpop.eup %2655 }
 0x333   : > { %v1324_v49 = vmul.f32 %v2656_v5, %v3823_v10 }
 0x334   : > { %v2658_v42 = vpop.eup %2657 }
 0x335   : > { %v1323_v53 = vmul.f32 %v2658_v42, %v3552_v41 }
 0x337   : > { %2329 = vmatprep.mubr.f32.mxu1 %v1323_v53 }
 0x338   : > { %2330 = vmatmul.mubr.f32.gmra.mxu1 %v1324_v49 }
 0x356   : > { %v2238_v20 = vpop.f32.mrf.mxu1 }
 0x357   : > { %1727 = vst [vmem:[%s3618_s18 + $0x8] sm:$0xff] %v2238_v20 }
 0x358   : > { %v1407_v0 = vpop.f32.mrf.mxu1 }
 0x359   : > { %1726 = vst [vmem:[%s3618_s18] sm:$0xff] %v1407_v0 }
 0x35e   : > { %v2241_v41 = vpop.f32.mrf.mxu1 }
 0x35f   : > { %1729 = vst [vmem:[%s3618_s18 + $0x18] sm:$0xff] %v2241_v41 }
 0x360   : > { %v1417_v50 = vpop.f32.mrf.mxu1 }
 0x361   : > { %1728 = vst [vmem:[%s3618_s18 + $0x10] sm:$0xff] %v1417_v50 }
 0x366   : > { %v2244_v40 = vpop.f32.mrf.mxu1 }
 0x367   : > { %1731 = vst [vmem:[%s3618_s18 + $0x28] sm:$0xff] %v2244_v40 }
 0x368   : > { %v1427_v16 = vpop.f32.mrf.mxu1 }
 0x369   : > { %1730 = vst [vmem:[%s3618_s18 + $0x20] sm:$0xff] %v1427_v16 }
 0x36e   : > { %v2247_v45 = vpop.f32.mrf.mxu1 }
 0x36f   : > { %1733 = vst [vmem:[%s3618_s18 + $0x38] sm:$0xff] %v2247_v45 }
 0x370   : > { %v1437_v26 = vpop.f32.mrf.mxu1 }
 0x371   : > { %1732 = vst [vmem:[%s3618_s18 + $0x30] sm:$0xff] %v1437_v26 }
 0x376   : > { %v2250_v15 = vpop.f32.mrf.mxu1 }
 0x377   : > { %1735 = vst [vmem:[%s3618_s18 + $0x48] sm:$0xff] %v2250_v15 }
 0x378   : > { %v1447_v28 = vpop.f32.mrf.mxu1 }
 0x379   : > { %1734 = vst [vmem:[%s3618_s18 + $0x40] sm:$0xff] %v1447_v28 }
 0x37e   : > { %v2253_v1 = vpop.f32.mrf.mxu1 }
 0x37f   : > { %1737 = vst [vmem:[%s3618_s18 + $0x58] sm:$0xff] %v2253_v1 }
 0x380   : > { %v1457_v55 = vpop.f32.mrf.mxu1 }
 0x381   : > { %1736 = vst [vmem:[%s3618_s18 + $0x50] sm:$0xff] %v1457_v55 }
 0x386   : > { %v2256_v4 = vpop.f32.mrf.mxu1 }
 0x387   : > { %1739 = vst [vmem:[%s3618_s18 + $0x68] sm:$0xff] %v2256_v4 }
 0x388   : > { %v1467_v54 = vpop.f32.mrf.mxu1 }
 0x389   : > { %1738 = vst [vmem:[%s3618_s18 + $0x60] sm:$0xff] %v1467_v54 }
 0x38e   : > { %v2259_v25 = vpop.f32.mrf.mxu1 }
 0x38f   : > { %1741 = vst [vmem:[%s3618_s18 + $0x78] sm:$0xff] %v2259_v25 }
 0x390   : > { %v1477_v8 = vpop.f32.mrf.mxu1 }
 0x391   : > { %1740 = vst [vmem:[%s3618_s18 + $0x70] sm:$0xff] %v1477_v8 }
 0x396   : > { %v2262_v48 = vpop.f32.mrf.mxu1 }
 0x397   : > { %1743 = vst [vmem:[%s3618_s18 + $0x88] sm:$0xff] %v2262_v48 }
 0x398   : > { %v1487_v18 = vpop.f32.mrf.mxu1 }
 0x399   : > { %1742 = vst [vmem:[%s3618_s18 + $0x80] sm:$0xff] %v1487_v18 }
 0x39d   : > { %v2265_v6 = vpop.f32.mrf.mxu1 }
 0x39e   : > { %1745 = vst [vmem:[%s3618_s18 + $0x98] sm:$0xff] %v2265_v6 }
 0x39f   : > { %v1497_v23 = vpop.f32.mrf.mxu1 }
 0x3a0   : > { %1744 = vst [vmem:[%s3618_s18 + $0x90] sm:$0xff] %v1497_v23 }
 0x3a1   : > { %v2268_v22 = vpop.f32.mrf.mxu1 }
 0x3a2   : > { %1747 = vst [vmem:[%s3618_s18 + $0xa8] sm:$0xff] %v2268_v22 }
 0x3a3   : > { %v1507_v47 = vpop.f32.mrf.mxu1 }
 0x3a4   : > { %1746 = vst [vmem:[%s3618_s18 + $0xa0] sm:$0xff] %v1507_v47 }
 0x3a5   : > { %v2271_v56 = vpop.f32.mrf.mxu1 }
 0x3a6   : > { %1749 = vst [vmem:[%s3618_s18 + $0xb8] sm:$0xff] %v2271_v56 }
 0x3a7   : > { %v1517_v29 = vpop.f32.mrf.mxu1 }
 0x3a8   : > { %1748 = vst [vmem:[%s3618_s18 + $0xb0] sm:$0xff] %v1517_v29 }
 0x3a9   : > { %v2274_v27 = vpop.f32.mrf.mxu1 }
 0x3aa   : > { %1751 = vst [vmem:[%s3618_s18 + $0xc8] sm:$0xff] %v2274_v27 }
 0x3ab   : > { %v1527_v31 = vpop.f32.mrf.mxu1 }
 0x3ac   : > { %1750 = vst [vmem:[%s3618_s18 + $0xc0] sm:$0xff] %v1527_v31 }
 0x3ad   : > { %v2277_v57 = vpop.f32.mrf.mxu1 }
 0x3ae   : > { %1753 = vst [vmem:[%s3618_s18 + $0xd8] sm:$0xff] %v2277_v57 }
 0x3af   : > { %v1537_v63 = vpop.f32.mrf.mxu1 }
 0x3b0   : > { %1752 = vst [vmem:[%s3618_s18 + $0xd0] sm:$0xff] %v1537_v63 }
 0x3b1   : > { %v2280_v33 = vpop.f32.mrf.mxu1 }
 0x3b2   : > { %1755 = vst [vmem:[%s3618_s18 + $0xe8] sm:$0xff] %v2280_v33 }
 0x3b3   : > { %v1547_v14 = vpop.f32.mrf.mxu1 }
 0x3b4   : > { %1754 = vst [vmem:[%s3618_s18 + $0xe0] sm:$0xff] %v1547_v14 }
 0x3b5   : > { %v2283_v36 = vpop.f32.mrf.mxu1 }
 0x3b6   : > { %1757 = vst [vmem:[%s3618_s18 + $0xf8] sm:$0xff] %v2283_v36 }
 0x3b7   : > { %v1557_v62 = vpop.f32.mrf.mxu1 }
 0x3b8   : > { %1756 = vst [vmem:[%s3618_s18 + $0xf0] sm:$0xff] %v1557_v62 }
 0x3b9   : > { %v2286_v32 = vpop.f32.mrf.mxu1 }
 0x3ba   : > { %1759 = vst [vmem:[%s3618_s18 + $0x108] sm:$0xff] %v2286_v32 }
 0x3bb   : > { %v1567_v7 = vpop.f32.mrf.mxu1 }
 0x3bc   : > { %1758 = vst [vmem:[%s3618_s18 + $0x100] sm:$0xff] %v1567_v7 }
 0x3bd   : > { %v2289_v35 = vpop.f32.mrf.mxu1 }
 0x3be   : > { %1761 = vst [vmem:[%s3618_s18 + $0x118] sm:$0xff] %v2289_v35 }
 0x3bf   : > { %v1577_v61 = vpop.f32.mrf.mxu1 }
 0x3c0   : > { %1760 = vst [vmem:[%s3618_s18 + $0x110] sm:$0xff] %v1577_v61 }
 0x3c1   : > { %v2292_v60 = vpop.f32.mrf.mxu1 }
 0x3c2   : > { %1763 = vst [vmem:[%s3618_s18 + $0x128] sm:$0xff] %v2292_v60 }
 0x3c3   : > { %v1587_v3 = vpop.f32.mrf.mxu1 }
 0x3c4   : > { %1762 = vst [vmem:[%s3618_s18 + $0x120] sm:$0xff] %v1587_v3 }
 0x3c5   : > { %v2295_v46 = vpop.f32.mrf.mxu1 }
 0x3c6   : > { %1765 = vst [vmem:[%s3618_s18 + $0x138] sm:$0xff] %v2295_v46 }
 0x3c7   : > { %v1597_v19 = vpop.f32.mrf.mxu1 }
 0x3c8   : > { %1764 = vst [vmem:[%s3618_s18 + $0x130] sm:$0xff] %v1597_v19 }
 0x3c9   : > { %v2298_v39 = vpop.f32.mrf.mxu1 }
 0x3ca   : > { %1767 = vst [vmem:[%s3618_s18 + $0x148] sm:$0xff] %v2298_v39 }
 0x3cb   : > { %v1607_v43 = vpop.f32.mrf.mxu1 }
 0x3cc   : > { %1766 = vst [vmem:[%s3618_s18 + $0x140] sm:$0xff] %v1607_v43 }
 0x3cd   : > { %v2301_v38 = vpop.f32.mrf.mxu1 }
 0x3ce   : > { %1769 = vst [vmem:[%s3618_s18 + $0x158] sm:$0xff] %v2301_v38 }
 0x3cf   : > { %v1617_v34 = vpop.f32.mrf.mxu1 }
 0x3d0   : > { %1768 = vst [vmem:[%s3618_s18 + $0x150] sm:$0xff] %v1617_v34 }
 0x3d1   : > { %v2304_v9 = vpop.f32.mrf.mxu1 }
 0x3d2   : > { %1771 = vst [vmem:[%s3618_s18 + $0x168] sm:$0xff] %v2304_v9 }
 0x3d3   : > { %v1627_v24 = vpop.f32.mrf.mxu1 }
 0x3d4   : > { %1770 = vst [vmem:[%s3618_s18 + $0x160] sm:$0xff] %v1627_v24 }
 0x3d5   : > { %v2307_v21 = vpop.f32.mrf.mxu1 }
 0x3d6   : > { %1773 = vst [vmem:[%s3618_s18 + $0x178] sm:$0xff] %v2307_v21 }
 0x3d7   : > { %v1637_v13 = vpop.f32.mrf.mxu1 }
 0x3d8   : > { %1772 = vst [vmem:[%s3618_s18 + $0x170] sm:$0xff] %v1637_v13 }
 0x3d9   : > { %v2310_v51 = vpop.f32.mrf.mxu1 }
 0x3da   : > { %1775 = vst [vmem:[%s3618_s18 + $0x188] sm:$0xff] %v2310_v51 }
 0x3db   : > { %v1647_v2 = vpop.f32.mrf.mxu1 }
 0x3dc   : > { %1774 = vst [vmem:[%s3618_s18 + $0x180] sm:$0xff] %v1647_v2 }
 0x3dd   : > { %v2313_v52 = vpop.f32.mrf.mxu1 }
 0x3de   : > { %1777 = vst [vmem:[%s3618_s18 + $0x198] sm:$0xff] %v2313_v52 }
 0x3df   : > { %v1657_v58 = vpop.f32.mrf.mxu1 }
 0x3e0   : > { %1776 = vst [vmem:[%s3618_s18 + $0x190] sm:$0xff] %v1657_v58 }
 0x3e1   : > { %v2316_v44 = vpop.f32.mrf.mxu1 }
 0x3e2   : > { %1779 = vst [vmem:[%s3618_s18 + $0x1a8] sm:$0xff] %v2316_v44 }
 0x3e3   : > { %v1667_v11 = vpop.f32.mrf.mxu1 }
 0x3e4   : > { %1778 = vst [vmem:[%s3618_s18 + $0x1a0] sm:$0xff] %v1667_v11 }
 0x3e5   : > { %v2319_v59 = vpop.f32.mrf.mxu1 }
 0x3e6   : > { %1781 = vst [vmem:[%s3618_s18 + $0x1b8] sm:$0xff] %v2319_v59 }
 0x3e7   : > { %v1677_v37 = vpop.f32.mrf.mxu1 }
 0x3e8   : > { %1780 = vst [vmem:[%s3618_s18 + $0x1b0] sm:$0xff] %v1677_v37 }
 0x3e9   : > { %v2322_v17 = vpop.f32.mrf.mxu1 }
 0x3ea   : > { %1783 = vst [vmem:[%s3618_s18 + $0x1c8] sm:$0xff] %v2322_v17 }
 0x3eb   : > { %v1687_v30 = vpop.f32.mrf.mxu1 }
 0x3ec   : > { %1782 = vst [vmem:[%s3618_s18 + $0x1c0] sm:$0xff] %v1687_v30 }
 0x3ed   : > { %v2325_v12 = vpop.f32.mrf.mxu1 }
 0x3ee   : > { %1785 = vst [vmem:[%s3618_s18 + $0x1d8] sm:$0xff] %v2325_v12 }
 0x3ef   : > { %v1697_v5 = vpop.f32.mrf.mxu1 }
 0x3f0   : > { %1784 = vst [vmem:[%s3618_s18 + $0x1d0] sm:$0xff] %v1697_v5 }
 0x3f1   : > { %v2328_v42 = vpop.f32.mrf.mxu1 }
 0x3f2   : > { %1787 = vst [vmem:[%s3618_s18 + $0x1e8] sm:$0xff] %v2328_v42 }
 0x3f3   : > { %v1707_v53 = vpop.f32.mrf.mxu1 }
 0x3f4   : > { %1786 = vst [vmem:[%s3618_s18 + $0x1e0] sm:$0xff] %v1707_v53 }
 0x3f8   : > { %v2331_v10 = vpop.f32.mrf.mxu1 }
 0x3f9   : > { %1789 = vst [vmem:[%s3618_s18 + $0x1f8] sm:$0xff] %v2331_v10 }
 0x3fa   : > { %v1717_v49 = vpop.f32.mrf.mxu1 }
 0x3fb   : > { %1788 = vst [vmem:[%s3618_s18 + $0x1f0] sm:$0xff] %v1717_v49 }
 0x3fc   : > { %2752 = shalt.err (!%p2749_p3)
}
 0x3fd   : > { %s2753_s17 = scalar_lea.hbm %s3687_s29, 8192  ;;  %s2757_s26 = scalar_lea.hbm %s3737_s3, 16384 }
 0x3fe   : > { %p2754_p11 = scmp.ne.s32.totalorder %s3687_s29, %s2753_s17  ;;  %p2758_p4 = scmp.lt.s32.totalorder %s3687_s29, %s3737_s3 }
 0x3ff   : > { %p2759_p6 = scmp.lt.s32.totalorder %s2757_s26, %s2753_s17 }
 0x400   : > { %p2755_p9 = pnand %p2754_p11, %p3824_p2 }
 0x401   : > { %p2760_p8 = por %p2759_p6, %p2758_p4 }
 0x402   : > { %p2756_p1 = pneg %p2755_p9 }
 0x404   : > { %p2761_p5 = pnand %p2760_p8, %p2756_p1 }
 0x406   : > { %2764 = shalt.err (!%p2761_p5)
}
 0x407   : > { %s2815_s30 = smov 128   ;;  %s2816_s18 = smov 8  }
 0x408   : > { %2342 = dma.vmem_to_hbm [thread:$0]  (%p3824_p2), %s3689_s27, 8192, %s3687_s29, %s1791_s4, %s2815_s30, %s2815_s30, %s2816_s18  }
 0x409 PF: > { %s1819_s20 = sand.u32 1, %s2795_s12   ;;  %p3825_p7 = scmp.ne.s32.totalorder %s3767_s19, 0 }
 0x40a   : > { %p3826_p12 = scmp.ge.s32.totalorder %s2807_s15, 2  ;;  %s1820_s28 = scalar_lea.sflag [#allocation4], %s1819_s20 }
 0x40c   : > { %p2356_p13 = pnand %p3826_p12, %p3825_p7 }
 0x40e   : > { %p2357_p0 = pneg %p2356_p13 }
 0x410   : > { %2790 = dma.done.wait (%p2357_p0), %s1820_s28, 8192  }
 0x411   : > { %2792 = vsyncadd (%p2357_p0), %s1820_s28, 4294959104  ;;  %p17_p10 = scmp.ge.s32.totalorder %s2915_s7, 4   ;;  %s3827_s12 = smov %s2799_s13 }
 0x412   : > { %s3828_s13 = smov %s2803_s14  ;;  %s3829_s14 = smov %s2931_s11 }
 0x413   : > { %s3830_s15 = smov %s2915_s7  ;;  %19 = sbr.rel (!%p17_p10) target bundleno = 6 (0x6), region = 85 }
 0x418   :  { %1825 = vsyncpa [#allocation3], 1 }
 0x419   :  { %1827 = vsyncpa [#allocation3 + $0x1], 1 }
 0x41a   :  { %1828 = vsyncpa [#allocation6], 1 }
 0x41b   :  { %1829 = vsyncpa [#allocation4], 1 }
 0x41c   :  { %1831 = vsyncpa [#allocation4 + $0x1], 1 }

</bundles_post_ra>
